<compile_context>
chip_gen: v7x
topology: tpu7x:2x2x1
jax: 0.10.0
libtpu: 0.0.40
codegen_flags: <defaults>
</compile_context>

<pallas_src>
import jax
import jax.numpy as jnp
from jax.experimental import pallas as pl
from jax.experimental.pallas import tpu as pltpu

FEAT_DIM = 128            # small synthetic stand-in for feat_dim=1024
NUM_HEADS = 8
LN_EPS = 1e-5

WEIGHT_ORDER = ("wq", "wk", "wv", "wo", "w1", "w2", "vecs", "bm1")

# Row indices of the packed (9, D) f32 vector operand.
_G1, _B1, _BQ, _BK, _BV, _BO, _G2, _B2, _BM2 = range(9)


# ---------------------------------------------------------------------------
# In-kernel helpers
# ---------------------------------------------------------------------------
def _layernorm(x, gamma, beta):
    mu = jnp.mean(x, axis=-1, keepdims=True)
    var = jnp.mean((x - mu) ** 2, axis=-1, keepdims=True)
    return (x - mu) * jax.lax.rsqrt(var + LN_EPS) * gamma + beta


def _gelu_tanh(x):
    # tanh-approx GELU: tanh lowers to the (otherwise idle) EUP slot instead of
    # a ~10-op erf polynomial on the VALU.  |tanh-gelu - exact-gelu| <= ~1e-3.
    c = jnp.float32(0.7978845608028654)           # sqrt(2/pi)
    return 0.5 * x * (1.0 + jnp.tanh(c * (x + 0.044715 * (x * x * x))))


# ---------------------------------------------------------------------------
# Pallas kernel: one grid step = Gb batch elements of one (or the fused) branch
#   norm1(x) -> MHA(emb, xn, xn) -> norm2 -> MLP + residual
# ---------------------------------------------------------------------------
def _make_kernel(gb, lq, lk, num_heads, head_dim):
    def kernel(x_ref, emb_ref,
               wq_ref, wk_ref, wv_ref, wo_ref, w1_ref, w2_ref,
               vec_ref, bm1_ref,
               out_ref, o_scr):
        row = lambda i: vec_ref[i:i + 1, :]            # (1, D) f32 slices

        x = x_ref[...].astype(jnp.float32)             # (gb*lk, D) keys/values
        emb = emb_ref[...].astype(jnp.float32)         # (gb*lq, D) query tokens

        # --- norm1 on keys/values (f32 VPU math) ------------------------------
        xn = _layernorm(x, row(_G1), row(_B1))

        # --- monolithic QKV projections: bf16 MXU inputs, f32 accumulation ----
        # 1/sqrt(head_dim) is pre-folded into wq / bq.
        emb_b = emb.astype(jnp.bfloat16)
        xn_b = xn.astype(jnp.bfloat16)
        q = jnp.dot(emb_b, wq_ref[...], preferred_element_type=jnp.float32) + row(_BQ)
        k = jnp.dot(xn_b, wk_ref[...], preferred_element_type=jnp.float32) + row(_BK)
        v = jnp.dot(xn_b, wv_ref[...], preferred_element_type=jnp.float32) + row(_BV)

        q_b = q.astype(jnp.bfloat16)
        k_b = k.astype(jnp.bfloat16)
        v_b = v.astype(jnp.bfloat16)

        # --- per-(batch, head) attention; outputs land in a lane-contiguous ---
        # --- (gb*lq, D) f32 scratch, then ONE output-projection matmul --------
        for b in range(gb):
            qrows = slice(b * lq, (b + 1) * lq)
            krows = slice(b * lk, (b + 1) * lk)
            for h in range(num_heads):
                cols = slice(h * head_dim, (h + 1) * head_dim)
                qh = q_b[qrows, cols]                  # (lq, hd)
                kh = k_b[krows, cols]                  # (lk, hd)
                vh = v_b[krows, cols]                  # (lk, hd)
                s = jax.lax.dot_general(
                    qh, kh, (((1,), (1,)), ((), ())),
                    preferred_element_type=jnp.float32)        # (lq, lk)
                s = s - jnp.max(s, axis=-1, keepdims=True)
                p = jnp.exp(s)
                p = p * pl.reciprocal(jnp.sum(p, axis=-1, keepdims=True),
                                      approx=True)
                oh = jnp.dot(p.astype(jnp.bfloat16), vh,
                             preferred_element_type=jnp.float32)  # (lq, hd)
                o_scr[qrows, cols] = oh

        attn = jnp.dot(o_scr[...].astype(jnp.bfloat16), wo_ref[...],
                       preferred_element_type=jnp.float32) + row(_BO)

        # --- norm2 + MLP + residual -------------------------------------------
        an = _layernorm(attn, row(_G2), row(_B2))
        h1 = jnp.dot(an.astype(jnp.bfloat16), w1_ref[...],
                     preferred_element_type=jnp.float32) + bm1_ref[...]
        h1 = _gelu_tanh(h1)
        h2 = jnp.dot(h1.astype(jnp.bfloat16), w2_ref[...],
                     preferred_element_type=jnp.float32) + row(_BM2)

        out_ref[...] = (h2 + attn).astype(out_ref.dtype)

    return kernel


def _choose_gb(batch, cap=8):
    """Largest divisor of `batch` that is <= cap (batch elements per step)."""
    gb = min(batch, cap)
    while batch % gb:
        gb -= 1
    return gb


def _attn_branch(xs, emb, kp):
    """xs: (G, Lk, D) stacked keys/values, emb: (B, Lq, D) queries."""
    G, Lk, D = xs.shape
    B, Lq, _ = emb.shape
    H = NUM_HEADS
    hd = D // H

    Gb = _choose_gb(B)
    nB = B // Gb
    n_steps = G // Gb

    # Host-side flatten so every grid step sees clean 2-D (rows, D) slabs.
    xs_flat = xs.reshape(G * Lk, D)
    emb_flat = emb.reshape(B * Lq, D)

    # Constant index_map + single buffering: the same weight block is reused by
    # every grid step, so double-buffering would only waste VMEM.
    weight_specs = [
        pl.BlockSpec(kp[n].shape, lambda g: (0, 0), pipeline_mode=pl.Buffered(1))
        for n in WEIGHT_ORDER
    ]

    # Cost estimate so XLA can schedule surrounding ops around the kernel.
    flops = 2 * G * ((Lq + 2 * Lk) * D * D     # QKV projections
                     + 2 * Lq * Lk * D         # scores + P@V
                     + Lq * D * D              # output projection
                     + 4 * Lq * D * D)         # MLP (D -> 2D -> D)
    transcendentals = G * (H * Lq * Lk + Lq * 2 * D)
    wbytes = sum(int(kp[n].size) * kp[n].dtype.itemsize for n in WEIGHT_ORDER)
    bytes_accessed = int(wbytes
                         + xs_flat.size * xs_flat.dtype.itemsize
                         + emb_flat.size * emb_flat.dtype.itemsize
                         + G * Lq * D * jnp.dtype(emb.dtype).itemsize)

    # Right-sized VMEM budget: weights (single-buffered) + 2x I/O blocks +
    # scratch + margin for compiler temporaries.
    blk_bytes = (Gb * Lk * D + 2 * Gb * Lq * D) * xs_flat.dtype.itemsize
    vmem_limit = wbytes + 2 * blk_bytes + Gb * Lq * D * 4 + (8 << 20)
    vmem_limit = int(min(max(vmem_limit, 16 << 20), 100 << 20))

    # Megacore sharding only pays off once per-core work amortizes the
    # duplicated constant-weight DMA.
    semantics = ("parallel",) if n_steps >= 16 else ("arbitrary",)

    out_flat = pl.pallas_call(
        _make_kernel(Gb, Lq, Lk, H, hd),
        out_shape=jax.ShapeDtypeStruct((G * Lq, D), emb.dtype),
        grid=(n_steps,),
        in_specs=[
            pl.BlockSpec((Gb * Lk, D), lambda g: (g, 0)),
            pl.BlockSpec((Gb * Lq, D), lambda g: (g % nB, 0)),
        ] + weight_specs,
        out_specs=pl.BlockSpec((Gb * Lq, D), lambda g: (g, 0)),
        scratch_shapes=[pltpu.VMEM((Gb * Lq, D), jnp.float32)],
        compiler_params=pltpu.CompilerParams(
            dimension_semantics=semantics,
            vmem_limit_bytes=vmem_limit,
        ),
        cost_estimate=pl.CostEstimate(
            flops=int(flops),
            transcendentals=int(transcendentals),
            bytes_accessed=bytes_accessed,
        ),
    )(xs_flat, emb_flat, *[kp[n] for n in WEIGHT_ORDER])
    return out_flat.reshape(G, Lq, D)


# ---------------------------------------------------------------------------
# Parameter prep: PyTorch layout -> kernel layout.  Runs ONCE (hoisted out of
# the forward pass); pass the returned pytree to `direct_qformer_block`.
# ---------------------------------------------------------------------------
def prepare_params(p):
    D = p["ln1_g"].shape[-1]
    scale = (D // NUM_HEADS) ** -0.5
    w_in, b_in = p["in_proj_weight"], p["in_proj_bias"]
    f32, bf16 = jnp.float32, jnp.bfloat16
    vecs = jnp.stack(
        [
            p["ln1_g"], p["ln1_b"],
            b_in[:D] * scale,                  # bq with 1/sqrt(hd) folded in
            b_in[D:2 * D], b_in[2 * D:],
            p["out_proj_bias"],
            p["ln2_g"], p["ln2_b"],
            p["mlp_b2"],
        ],
        axis=0,
    ).astype(f32)                              # (9, D)
    return {
        "wq": (w_in[:D].T * scale).astype(bf16),   # 1/sqrt(hd) folded into Wq
        "wk": w_in[D:2 * D].T.astype(bf16),
        "wv": w_in[2 * D:].T.astype(bf16),
        "wo": p["out_proj_weight"].T.astype(bf16),
        "w1": p["mlp_w1"].T.astype(bf16),
        "w2": p["mlp_w2"].T.astype(bf16),
        "vecs": vecs,
        "bm1": p["mlp_b1"].reshape(1, 2 * D).astype(f32),
    }


@jax.jit
def direct_qformer_block(x1, x2, embedding, prepared_params):
    """Forward pass of DirectQformerBlock; returns (out1, out2, embedding).

    `prepared_params` must come from `prepare_params(...)` (computed once,
    outside the per-step path).
    """
    B = embedding.shape[0]
    if x1.shape == x2.shape:
        # Fuse both branches into one pallas_call: weights DMA'd once,
        # grid covers 2*B batch elements.
        xs = jnp.concatenate([x1, x2], axis=0)
        out = _attn_branch(xs, embedding, prepared_params)
        out1, out2 = out[:B], out[B:]
    else:
        out1 = _attn_branch(x1, embedding, prepared_params)
        out2 = _attn_branch(x2, embedding, prepared_params)
    return out1, out2, embedding


# ---------------------------------------------------------------------------
# Deterministic parameter init (PyTorch-shaped) and pure-JAX f32 reference
# ---------------------------------------------------------------------------
def init_params(key, D=FEAT_DIM, scale=0.02):
    ks = jax.random.split(key, 12)
    f32 = jnp.float32
    return {
        "ln1_g": 1.0 + 0.1 * jax.random.normal(ks[0], (D,), f32),
        "ln1_b": 0.1 * jax.random.normal(ks[1], (D,), f32),
        "ln2_g": 1.0 + 0.1 * jax.random.normal(ks[2], (D,), f32),
        "ln2_b": 0.1 * jax.random.normal(ks[3], (D,), f32),
        "in_proj_weight": scale * jax.random.normal(ks[4], (3 * D, D), f32),
        "in_proj_bias": scale * jax.random.normal(ks[5], (3 * D,), f32),
        "out_proj_weight": scale * jax.random.normal(ks[6], (D, D), f32),
        "out_proj_bias": scale * jax.random.normal(ks[7], (D,), f32),
        "mlp_w1": scale * jax.random.normal(ks[8], (2 * D, D), f32),
        "mlp_b1": scale * jax.random.normal(ks[9], (2 * D,), f32),
        "mlp_w2": scale * jax.random.normal(ks[10], (D, 2 * D), f32),
        "mlp_b2": scale * jax.random.normal(ks[11], (D,), f32),
    }


def reference(x1, x2, emb, p):
    def ln(x, g, b):
        mu = jnp.mean(x, axis=-1, keepdims=True)
        var = jnp.mean((x - mu) ** 2, axis=-1, keepdims=True)
        return (x - mu) / jnp.sqrt(var + LN_EPS) * g + b

    D = emb.shape[-1]
    hd = D // NUM_HEADS
    wq, wk, wv = (p["in_proj_weight"][:D], p["in_proj_weight"][D:2 * D],
                  p["in_proj_weight"][2 * D:])
    bq, bk, bv = (p["in_proj_bias"][:D], p["in_proj_bias"][D:2 * D],
                  p["in_proj_bias"][2 * D:])

    def branch(x):
        B, Lq, _ = emb.shape
        Lk = x.shape[1]
        xn = ln(x, p["ln1_g"], p["ln1_b"])
        q = emb @ wq.T + bq
        k = xn @ wk.T + bk
        v = xn @ wv.T + bv
        qh = q.reshape(B, Lq, NUM_HEADS, hd).transpose(0, 2, 1, 3)
        kh = k.reshape(B, Lk, NUM_HEADS, hd).transpose(0, 2, 1, 3)
        vh = v.reshape(B, Lk, NUM_HEADS, hd).transpose(0, 2, 1, 3)
        s = jnp.einsum("bhqd,bhkd->bhqk", qh, kh) / jnp.sqrt(jnp.float32(hd))
        pr = jax.nn.softmax(s, axis=-1)
        o = jnp.einsum("bhqk,bhkd->bhqd", pr, vh).transpose(0, 2, 1, 3).reshape(B, Lq, D)
        o = o @ p["out_proj_weight"].T + p["out_proj_bias"]
        on = ln(o, p["ln2_g"], p["ln2_b"])
        h = jax.nn.gelu(on @ p["mlp_w1"].T + p["mlp_b1"], approximate=False)
        return h @ p["mlp_w2"].T + p["mlp_b2"] + o

    return branch(x1), branch(x2), emb


if __name__ == "__main__":
    key = jax.random.PRNGKey(0)
    B, Lk, Lq, D = 2, 16, 8, FEAT_DIM
    k1, k2, k3, kp_key = jax.random.split(key, 4)
    x1 = jax.random.normal(k1, (B, Lk, D), jnp.float32)
    x2 = jax.random.normal(k2, (B, Lk, D), jnp.float32)
    embedding = jax.random.normal(k3, (B, Lq, D), jnp.float32)
    params = init_params(kp_key, D)

    # Weight prep runs ONCE, outside the jitted forward.
    prepared = jax.tree_util.tree_map(jnp.asarray, prepare_params(params))

    out1, out2, out_emb = direct_qformer_block(x1, x2, embedding, prepared)
    jax.block_until_ready((out1, out2, out_emb))

    r1, r2, _ = reference(x1, x2, embedding, params)
    assert out1.shape == (B, Lq, D) and out2.shape == (B, Lq, D)
    # bf16 MXU inputs + tanh-GELU + approx-EUP reciprocal vs an exact-f32
    # reference -> loose tolerance (observed errors are ~1e-3, margin ~10x).
    err1 = float(jnp.max(jnp.abs(out1 - r1)))
    err2 = float(jnp.max(jnp.abs(out2 - r2)))
    assert err1 < 3e-2, f"branch-1 mismatch: max abs err {err1}"
    assert err2 < 3e-2, f"branch-2 mismatch: max abs err {err2}"
    assert jnp.array_equal(out_emb, embedding)
    print("KERNEL_OK")
</pallas_src>

<mosaic_0001>
module attributes {stable_mosaic.version = 11 : i64} {
  func.func @kernel(%arg0: i32, %arg1: memref<32x128xf32, #tpu.memory_space<vmem>>, %arg2: memref<16x128xf32, #tpu.memory_space<vmem>>, %arg3: memref<128x128xbf16, #tpu.memory_space<vmem>>, %arg4: memref<128x128xbf16, #tpu.memory_space<vmem>>, %arg5: memref<128x128xbf16, #tpu.memory_space<vmem>>, %arg6: memref<128x128xbf16, #tpu.memory_space<vmem>>, %arg7: memref<128x256xbf16, #tpu.memory_space<vmem>>, %arg8: memref<256x128xbf16, #tpu.memory_space<vmem>>, %arg9: memref<9x128xf32, #tpu.memory_space<vmem>>, %arg10: memref<1x256xf32, #tpu.memory_space<vmem>>, %arg11: memref<16x128xf32, #tpu.memory_space<vmem>>, %arg12: memref<16x128xf32, #tpu.memory_space<vmem>>) attributes {dimension_semantics = [#tpu.dimension_semantics<arbitrary>], iteration_bounds = array<i64: 2>, scalar_prefetch = 0 : i64, scratch_operands = 1 : i64, tpu.core_type = #tpu.core_type<tc>, window_params = [{transform_indices = @transform_0, window_bounds = array<i64: 32, 128>}, {transform_indices = @transform_1, window_bounds = array<i64: 16, 128>}, {pipeline_mode = #tpu.pipeline_mode<synchronous>, transform_indices = @transform_2, window_bounds = array<i64: 128, 128>}, {pipeline_mode = #tpu.pipeline_mode<synchronous>, transform_indices = @transform_3, window_bounds = array<i64: 128, 128>}, {pipeline_mode = #tpu.pipeline_mode<synchronous>, transform_indices = @transform_4, window_bounds = array<i64: 128, 128>}, {pipeline_mode = #tpu.pipeline_mode<synchronous>, transform_indices = @transform_5, window_bounds = array<i64: 128, 128>}, {pipeline_mode = #tpu.pipeline_mode<synchronous>, transform_indices = @transform_6, window_bounds = array<i64: 128, 256>}, {pipeline_mode = #tpu.pipeline_mode<synchronous>, transform_indices = @transform_7, window_bounds = array<i64: 256, 128>}, {pipeline_mode = #tpu.pipeline_mode<synchronous>, transform_indices = @transform_8, window_bounds = array<i64: 9, 128>}, {pipeline_mode = #tpu.pipeline_mode<synchronous>, transform_indices = @transform_9, window_bounds = array<i64: 1, 256>}, {transform_indices = @transform_10, window_bounds = array<i64: 16, 128>}]} {
    %c0 = arith.constant 0 : index
    %c0_0 = arith.constant 0 : index
    %0 = vector.load %arg1[%c0, %c0_0] : memref<32x128xf32, #tpu.memory_space<vmem>>, vector<32x128xf32>
    %c0_1 = arith.constant 0 : index
    %c0_2 = arith.constant 0 : index
    %1 = vector.load %arg2[%c0_1, %c0_2] : memref<16x128xf32, #tpu.memory_space<vmem>>, vector<16x128xf32>
    %c0_3 = arith.constant 0 : index
    %c0_4 = arith.constant 0 : index
    %2 = vector.load %arg9[%c0_3, %c0_4] : memref<9x128xf32, #tpu.memory_space<vmem>>, vector<1x128xf32>
    %c1 = arith.constant 1 : index
    %c0_5 = arith.constant 0 : index
    %3 = vector.load %arg9[%c1, %c0_5] : memref<9x128xf32, #tpu.memory_space<vmem>>, vector<1x128xf32>
    %cst = arith.constant dense<0.000000e+00> : vector<32xf32>
    %4 = vector.multi_reduction <add>, %0, %cst [1] : vector<32x128xf32> to vector<32xf32>
    %5 = vector.shape_cast %4 : vector<32xf32> to vector<32x1xf32>
    %cst_6 = arith.constant 1.280000e+02 : f32
    %6 = vector.broadcast %cst_6 : f32 to vector<32x1xf32>
    %7 = arith.divf %5, %6 : vector<32x1xf32>
    %8 = vector.broadcast %7 : vector<32x1xf32> to vector<32x128xf32>
    %9 = arith.subf %0, %8 : vector<32x128xf32>
    %10 = arith.mulf %9, %9 : vector<32x128xf32>
    %cst_7 = arith.constant dense<0.000000e+00> : vector<32xf32>
    %11 = vector.multi_reduction <add>, %10, %cst_7 [1] : vector<32x128xf32> to vector<32xf32>
    %12 = vector.shape_cast %11 : vector<32xf32> to vector<32x1xf32>
    %cst_8 = arith.constant 1.280000e+02 : f32
    %13 = vector.broadcast %cst_8 : f32 to vector<32x1xf32>
    %14 = arith.divf %12, %13 : vector<32x1xf32>
    %15 = vector.broadcast %7 : vector<32x1xf32> to vector<32x128xf32>
    %16 = arith.subf %0, %15 : vector<32x128xf32>
    %cst_9 = arith.constant 9.99999974E-6 : f32
    %17 = vector.broadcast %cst_9 : f32 to vector<32x1xf32>
    %18 = arith.addf %14, %17 : vector<32x1xf32>
    %19 = math.rsqrt %18 : vector<32x1xf32>
    %20 = vector.broadcast %19 : vector<32x1xf32> to vector<32x128xf32>
    %21 = arith.mulf %16, %20 : vector<32x128xf32>
    %22 = vector.broadcast %2 : vector<1x128xf32> to vector<32x128xf32>
    %23 = arith.mulf %21, %22 : vector<32x128xf32>
    %24 = vector.broadcast %3 : vector<1x128xf32> to vector<32x128xf32>
    %25 = arith.addf %23, %24 : vector<32x128xf32>
    %26 = arith.truncf %1 : vector<16x128xf32> to vector<16x128xbf16>
    %27 = arith.truncf %25 : vector<32x128xf32> to vector<32x128xbf16>
    %c0_10 = arith.constant 0 : index
    %c0_11 = arith.constant 0 : index
    %28 = vector.load %arg3[%c0_10, %c0_11] : memref<128x128xbf16, #tpu.memory_space<vmem>>, vector<128x128xbf16>
    %cst_12 = arith.constant dense<0.000000e+00> : vector<16x128xf32>
    %29 = tpu.matmul %26, %28, %cst_12 {dimension_numbers = #tpu.dot_dimension_numbers<[1], [0], [0], [1], [0, 0, 1, 1], [], []>} : vector<16x128xbf16>, vector<128x128xbf16>, vector<16x128xf32> -> vector<16x128xf32>
    %c2 = arith.constant 2 : index
    %c0_13 = arith.constant 0 : index
    %30 = vector.load %arg9[%c2, %c0_13] : memref<9x128xf32, #tpu.memory_space<vmem>>, vector<1x128xf32>
    %31 = vector.broadcast %30 : vector<1x128xf32> to vector<16x128xf32>
    %32 = arith.addf %29, %31 : vector<16x128xf32>
    %c0_14 = arith.constant 0 : index
    %c0_15 = arith.constant 0 : index
    %33 = vector.load %arg4[%c0_14, %c0_15] : memref<128x128xbf16, #tpu.memory_space<vmem>>, vector<128x128xbf16>
    %cst_16 = arith.constant dense<0.000000e+00> : vector<32x128xf32>
    %34 = tpu.matmul %27, %33, %cst_16 {dimension_numbers = #tpu.dot_dimension_numbers<[1], [0], [0], [1], [0, 0, 1, 1], [], []>} : vector<32x128xbf16>, vector<128x128xbf16>, vector<32x128xf32> -> vector<32x128xf32>
    %c3 = arith.constant 3 : index
    %c0_17 = arith.constant 0 : index
    %35 = vector.load %arg9[%c3, %c0_17] : memref<9x128xf32, #tpu.memory_space<vmem>>, vector<1x128xf32>
    %36 = vector.broadcast %35 : vector<1x128xf32> to vector<32x128xf32>
    %37 = arith.addf %34, %36 : vector<32x128xf32>
    %c0_18 = arith.constant 0 : index
    %c0_19 = arith.constant 0 : index
    %38 = vector.load %arg5[%c0_18, %c0_19] : memref<128x128xbf16, #tpu.memory_space<vmem>>, vector<128x128xbf16>
    %cst_20 = arith.constant dense<0.000000e+00> : vector<32x128xf32>
    %39 = tpu.matmul %27, %38, %cst_20 {dimension_numbers = #tpu.dot_dimension_numbers<[1], [0], [0], [1], [0, 0, 1, 1], [], []>} : vector<32x128xbf16>, vector<128x128xbf16>, vector<32x128xf32> -> vector<32x128xf32>
    %c4 = arith.constant 4 : index
    %c0_21 = arith.constant 0 : index
    %40 = vector.load %arg9[%c4, %c0_21] : memref<9x128xf32, #tpu.memory_space<vmem>>, vector<1x128xf32>
    %41 = vector.broadcast %40 : vector<1x128xf32> to vector<32x128xf32>
    %42 = arith.addf %39, %41 : vector<32x128xf32>
    %43 = arith.truncf %32 : vector<16x128xf32> to vector<16x128xbf16>
    %44 = arith.truncf %37 : vector<32x128xf32> to vector<32x128xbf16>
    %45 = arith.truncf %42 : vector<32x128xf32> to vector<32x128xbf16>
    %46 = vector.extract_strided_slice %43 {offsets = [0, 0], sizes = [8, 16], strides = [1, 1]} : vector<16x128xbf16> to vector<8x16xbf16>
    %47 = vector.extract_strided_slice %44 {offsets = [0, 0], sizes = [16, 16], strides = [1, 1]} : vector<32x128xbf16> to vector<16x16xbf16>
    %48 = vector.extract_strided_slice %45 {offsets = [0, 0], sizes = [16, 16], strides = [1, 1]} : vector<32x128xbf16> to vector<16x16xbf16>
    %cst_22 = arith.constant dense<0.000000e+00> : vector<8x16xf32>
    %49 = tpu.matmul %46, %47, %cst_22 {dimension_numbers = #tpu.dot_dimension_numbers<[1], [1], [0], [0], [0, 0, 1, 0], [], []>} : vector<8x16xbf16>, vector<16x16xbf16>, vector<8x16xf32> -> vector<8x16xf32>
    %cst_23 = arith.constant dense<0xFF800000> : vector<8xf32>
    %50 = vector.multi_reduction <maximumf>, %49, %cst_23 [1] : vector<8x16xf32> to vector<8xf32>
    %51 = vector.shape_cast %50 : vector<8xf32> to vector<8x1xf32>
    %52 = vector.broadcast %51 : vector<8x1xf32> to vector<8x16xf32>
    %53 = arith.subf %49, %52 : vector<8x16xf32>
    %54 = math.exp %53 : vector<8x16xf32>
    %cst_24 = arith.constant dense<0.000000e+00> : vector<8xf32>
    %55 = vector.multi_reduction <add>, %54, %cst_24 [1] : vector<8x16xf32> to vector<8xf32>
    %56 = vector.shape_cast %55 : vector<8xf32> to vector<8x1xf32>
    %57 = tpu.reciprocal %56 {approx = true} : vector<8x1xf32> -> vector<8x1xf32>
    %58 = vector.broadcast %57 : vector<8x1xf32> to vector<8x16xf32>
    %59 = arith.mulf %54, %58 : vector<8x16xf32>
    %60 = arith.truncf %59 : vector<8x16xf32> to vector<8x16xbf16>
    %cst_25 = arith.constant dense<0.000000e+00> : vector<8x16xf32>
    %61 = tpu.matmul %60, %48, %cst_25 {dimension_numbers = #tpu.dot_dimension_numbers<[1], [0], [0], [1], [0, 0, 1, 1], [], []>} : vector<8x16xbf16>, vector<16x16xbf16>, vector<8x16xf32> -> vector<8x16xf32>
    %c0_26 = arith.constant 0 : index
    %c0_27 = arith.constant 0 : index
    %62 = vector.load %arg12[%c0_26, %c0_27] : memref<16x128xf32, #tpu.memory_space<vmem>>, vector<8x16xf32>
    tpu.vector_store %arg12[%c0_26, %c0_27], %61 {strides = array<i32>} : memref<16x128xf32, #tpu.memory_space<vmem>>, vector<8x16xf32>,
    %63 = vector.extract_strided_slice %43 {offsets = [0, 16], sizes = [8, 16], strides = [1, 1]} : vector<16x128xbf16> to vector<8x16xbf16>
    %64 = vector.extract_strided_slice %44 {offsets = [0, 16], sizes = [16, 16], strides = [1, 1]} : vector<32x128xbf16> to vector<16x16xbf16>
    %65 = vector.extract_strided_slice %45 {offsets = [0, 16], sizes = [16, 16], strides = [1, 1]} : vector<32x128xbf16> to vector<16x16xbf16>
    %cst_28 = arith.constant dense<0.000000e+00> : vector<8x16xf32>
    %66 = tpu.matmul %63, %64, %cst_28 {dimension_numbers = #tpu.dot_dimension_numbers<[1], [1], [0], [0], [0, 0, 1, 0], [], []>} : vector<8x16xbf16>, vector<16x16xbf16>, vector<8x16xf32> -> vector<8x16xf32>
    %cst_29 = arith.constant dense<0xFF800000> : vector<8xf32>
    %67 = vector.multi_reduction <maximumf>, %66, %cst_29 [1] : vector<8x16xf32> to vector<8xf32>
    %68 = vector.shape_cast %67 : vector<8xf32> to vector<8x1xf32>
    %69 = vector.broadcast %68 : vector<8x1xf32> to vector<8x16xf32>
    %70 = arith.subf %66, %69 : vector<8x16xf32>
    %71 = math.exp %70 : vector<8x16xf32>
    %cst_30 = arith.constant dense<0.000000e+00> : vector<8xf32>
    %72 = vector.multi_reduction <add>, %71, %cst_30 [1] : vector<8x16xf32> to vector<8xf32>
    %73 = vector.shape_cast %72 : vector<8xf32> to vector<8x1xf32>
    %74 = tpu.reciprocal %73 {approx = true} : vector<8x1xf32> -> vector<8x1xf32>
    %75 = vector.broadcast %74 : vector<8x1xf32> to vector<8x16xf32>
    %76 = arith.mulf %71, %75 : vector<8x16xf32>
    %77 = arith.truncf %76 : vector<8x16xf32> to vector<8x16xbf16>
    %cst_31 = arith.constant dense<0.000000e+00> : vector<8x16xf32>
    %78 = tpu.matmul %77, %65, %cst_31 {dimension_numbers = #tpu.dot_dimension_numbers<[1], [0], [0], [1], [0, 0, 1, 1], [], []>} : vector<8x16xbf16>, vector<16x16xbf16>, vector<8x16xf32> -> vector<8x16xf32>
    %c0_32 = arith.constant 0 : index
    %c16 = arith.constant 16 : index
    %79 = vector.load %arg12[%c0_32, %c16] : memref<16x128xf32, #tpu.memory_space<vmem>>, vector<8x16xf32>
    tpu.vector_store %arg12[%c0_32, %c16], %78 {strides = array<i32>} : memref<16x128xf32, #tpu.memory_space<vmem>>, vector<8x16xf32>,
    %80 = vector.extract_strided_slice %43 {offsets = [0, 32], sizes = [8, 16], strides = [1, 1]} : vector<16x128xbf16> to vector<8x16xbf16>
    %81 = vector.extract_strided_slice %44 {offsets = [0, 32], sizes = [16, 16], strides = [1, 1]} : vector<32x128xbf16> to vector<16x16xbf16>
    %82 = vector.extract_strided_slice %45 {offsets = [0, 32], sizes = [16, 16], strides = [1, 1]} : vector<32x128xbf16> to vector<16x16xbf16>
    %cst_33 = arith.constant dense<0.000000e+00> : vector<8x16xf32>
    %83 = tpu.matmul %80, %81, %cst_33 {dimension_numbers = #tpu.dot_dimension_numbers<[1], [1], [0], [0], [0, 0, 1, 0], [], []>} : vector<8x16xbf16>, vector<16x16xbf16>, vector<8x16xf32> -> vector<8x16xf32>
    %cst_34 = arith.constant dense<0xFF800000> : vector<8xf32>
    %84 = vector.multi_reduction <maximumf>, %83, %cst_34 [1] : vector<8x16xf32> to vector<8xf32>
    %85 = vector.shape_cast %84 : vector<8xf32> to vector<8x1xf32>
    %86 = vector.broadcast %85 : vector<8x1xf32> to vector<8x16xf32>
    %87 = arith.subf %83, %86 : vector<8x16xf32>
    %88 = math.exp %87 : vector<8x16xf32>
    %cst_35 = arith.constant dense<0.000000e+00> : vector<8xf32>
    %89 = vector.multi_reduction <add>, %88, %cst_35 [1] : vector<8x16xf32> to vector<8xf32>
    %90 = vector.shape_cast %89 : vector<8xf32> to vector<8x1xf32>
    %91 = tpu.reciprocal %90 {approx = true} : vector<8x1xf32> -> vector<8x1xf32>
    %92 = vector.broadcast %91 : vector<8x1xf32> to vector<8x16xf32>
    %93 = arith.mulf %88, %92 : vector<8x16xf32>
    %94 = arith.truncf %93 : vector<8x16xf32> to vector<8x16xbf16>
    %cst_36 = arith.constant dense<0.000000e+00> : vector<8x16xf32>
    %95 = tpu.matmul %94, %82, %cst_36 {dimension_numbers = #tpu.dot_dimension_numbers<[1], [0], [0], [1], [0, 0, 1, 1], [], []>} : vector<8x16xbf16>, vector<16x16xbf16>, vector<8x16xf32> -> vector<8x16xf32>
    %c0_37 = arith.constant 0 : index
    %c32 = arith.constant 32 : index
    %96 = vector.load %arg12[%c0_37, %c32] : memref<16x128xf32, #tpu.memory_space<vmem>>, vector<8x16xf32>
    tpu.vector_store %arg12[%c0_37, %c32], %95 {strides = array<i32>} : memref<16x128xf32, #tpu.memory_space<vmem>>, vector<8x16xf32>,
    %97 = vector.extract_strided_slice %43 {offsets = [0, 48], sizes = [8, 16], strides = [1, 1]} : vector<16x128xbf16> to vector<8x16xbf16>
    %98 = vector.extract_strided_slice %44 {offsets = [0, 48], sizes = [16, 16], strides = [1, 1]} : vector<32x128xbf16> to vector<16x16xbf16>
    %99 = vector.extract_strided_slice %45 {offsets = [0, 48], sizes = [16, 16], strides = [1, 1]} : vector<32x128xbf16> to vector<16x16xbf16>
    %cst_38 = arith.constant dense<0.000000e+00> : vector<8x16xf32>
    %100 = tpu.matmul %97, %98, %cst_38 {dimension_numbers = #tpu.dot_dimension_numbers<[1], [1], [0], [0], [0, 0, 1, 0], [], []>} : vector<8x16xbf16>, vector<16x16xbf16>, vector<8x16xf32> -> vector<8x16xf32>
    %cst_39 = arith.constant dense<0xFF800000> : vector<8xf32>
    %101 = vector.multi_reduction <maximumf>, %100, %cst_39 [1] : vector<8x16xf32> to vector<8xf32>
    %102 = vector.shape_cast %101 : vector<8xf32> to vector<8x1xf32>
    %103 = vector.broadcast %102 : vector<8x1xf32> to vector<8x16xf32>
    %104 = arith.subf %100, %103 : vector<8x16xf32>
    %105 = math.exp %104 : vector<8x16xf32>
    %cst_40 = arith.constant dense<0.000000e+00> : vector<8xf32>
    %106 = vector.multi_reduction <add>, %105, %cst_40 [1] : vector<8x16xf32> to vector<8xf32>
    %107 = vector.shape_cast %106 : vector<8xf32> to vector<8x1xf32>
    %108 = tpu.reciprocal %107 {approx = true} : vector<8x1xf32> -> vector<8x1xf32>
    %109 = vector.broadcast %108 : vector<8x1xf32> to vector<8x16xf32>
    %110 = arith.mulf %105, %109 : vector<8x16xf32>
    %111 = arith.truncf %110 : vector<8x16xf32> to vector<8x16xbf16>
    %cst_41 = arith.constant dense<0.000000e+00> : vector<8x16xf32>
    %112 = tpu.matmul %111, %99, %cst_41 {dimension_numbers = #tpu.dot_dimension_numbers<[1], [0], [0], [1], [0, 0, 1, 1], [], []>} : vector<8x16xbf16>, vector<16x16xbf16>, vector<8x16xf32> -> vector<8x16xf32>
    %c0_42 = arith.constant 0 : index
    %c48 = arith.constant 48 : index
    %113 = vector.load %arg12[%c0_42, %c48] : memref<16x128xf32, #tpu.memory_space<vmem>>, vector<8x16xf32>
    tpu.vector_store %arg12[%c0_42, %c48], %112 {strides = array<i32>} : memref<16x128xf32, #tpu.memory_space<vmem>>, vector<8x16xf32>,
    %114 = vector.extract_strided_slice %43 {offsets = [0, 64], sizes = [8, 16], strides = [1, 1]} : vector<16x128xbf16> to vector<8x16xbf16>
    %115 = vector.extract_strided_slice %44 {offsets = [0, 64], sizes = [16, 16], strides = [1, 1]} : vector<32x128xbf16> to vector<16x16xbf16>
    %116 = vector.extract_strided_slice %45 {offsets = [0, 64], sizes = [16, 16], strides = [1, 1]} : vector<32x128xbf16> to vector<16x16xbf16>
    %cst_43 = arith.constant dense<0.000000e+00> : vector<8x16xf32>
    %117 = tpu.matmul %114, %115, %cst_43 {dimension_numbers = #tpu.dot_dimension_numbers<[1], [1], [0], [0], [0, 0, 1, 0], [], []>} : vector<8x16xbf16>, vector<16x16xbf16>, vector<8x16xf32> -> vector<8x16xf32>
    %cst_44 = arith.constant dense<0xFF800000> : vector<8xf32>
    %118 = vector.multi_reduction <maximumf>, %117, %cst_44 [1] : vector<8x16xf32> to vector<8xf32>
    %119 = vector.shape_cast %118 : vector<8xf32> to vector<8x1xf32>
    %120 = vector.broadcast %119 : vector<8x1xf32> to vector<8x16xf32>
    %121 = arith.subf %117, %120 : vector<8x16xf32>
    %122 = math.exp %121 : vector<8x16xf32>
    %cst_45 = arith.constant dense<0.000000e+00> : vector<8xf32>
    %123 = vector.multi_reduction <add>, %122, %cst_45 [1] : vector<8x16xf32> to vector<8xf32>
    %124 = vector.shape_cast %123 : vector<8xf32> to vector<8x1xf32>
    %125 = tpu.reciprocal %124 {approx = true} : vector<8x1xf32> -> vector<8x1xf32>
    %126 = vector.broadcast %125 : vector<8x1xf32> to vector<8x16xf32>
    %127 = arith.mulf %122, %126 : vector<8x16xf32>
    %128 = arith.truncf %127 : vector<8x16xf32> to vector<8x16xbf16>
    %cst_46 = arith.constant dense<0.000000e+00> : vector<8x16xf32>
    %129 = tpu.matmul %128, %116, %cst_46 {dimension_numbers = #tpu.dot_dimension_numbers<[1], [0], [0], [1], [0, 0, 1, 1], [], []>} : vector<8x16xbf16>, vector<16x16xbf16>, vector<8x16xf32> -> vector<8x16xf32>
    %c0_47 = arith.constant 0 : index
    %c64 = arith.constant 64 : index
    %130 = vector.load %arg12[%c0_47, %c64] : memref<16x128xf32, #tpu.memory_space<vmem>>, vector<8x16xf32>
    tpu.vector_store %arg12[%c0_47, %c64], %129 {strides = array<i32>} : memref<16x128xf32, #tpu.memory_space<vmem>>, vector<8x16xf32>,
    %131 = vector.extract_strided_slice %43 {offsets = [0, 80], sizes = [8, 16], strides = [1, 1]} : vector<16x128xbf16> to vector<8x16xbf16>
    %132 = vector.extract_strided_slice %44 {offsets = [0, 80], sizes = [16, 16], strides = [1, 1]} : vector<32x128xbf16> to vector<16x16xbf16>
    %133 = vector.extract_strided_slice %45 {offsets = [0, 80], sizes = [16, 16], strides = [1, 1]} : vector<32x128xbf16> to vector<16x16xbf16>
    %cst_48 = arith.constant dense<0.000000e+00> : vector<8x16xf32>
    %134 = tpu.matmul %131, %132, %cst_48 {dimension_numbers = #tpu.dot_dimension_numbers<[1], [1], [0], [0], [0, 0, 1, 0], [], []>} : vector<8x16xbf16>, vector<16x16xbf16>, vector<8x16xf32> -> vector<8x16xf32>
    %cst_49 = arith.constant dense<0xFF800000> : vector<8xf32>
    %135 = vector.multi_reduction <maximumf>, %134, %cst_49 [1] : vector<8x16xf32> to vector<8xf32>
    %136 = vector.shape_cast %135 : vector<8xf32> to vector<8x1xf32>
    %137 = vector.broadcast %136 : vector<8x1xf32> to vector<8x16xf32>
    %138 = arith.subf %134, %137 : vector<8x16xf32>
    %139 = math.exp %138 : vector<8x16xf32>
    %cst_50 = arith.constant dense<0.000000e+00> : vector<8xf32>
    %140 = vector.multi_reduction <add>, %139, %cst_50 [1] : vector<8x16xf32> to vector<8xf32>
    %141 = vector.shape_cast %140 : vector<8xf32> to vector<8x1xf32>
    %142 = tpu.reciprocal %141 {approx = true} : vector<8x1xf32> -> vector<8x1xf32>
    %143 = vector.broadcast %142 : vector<8x1xf32> to vector<8x16xf32>
    %144 = arith.mulf %139, %143 : vector<8x16xf32>
    %145 = arith.truncf %144 : vector<8x16xf32> to vector<8x16xbf16>
    %cst_51 = arith.constant dense<0.000000e+00> : vector<8x16xf32>
    %146 = tpu.matmul %145, %133, %cst_51 {dimension_numbers = #tpu.dot_dimension_numbers<[1], [0], [0], [1], [0, 0, 1, 1], [], []>} : vector<8x16xbf16>, vector<16x16xbf16>, vector<8x16xf32> -> vector<8x16xf32>
    %c0_52 = arith.constant 0 : index
    %c80 = arith.constant 80 : index
    %147 = vector.load %arg12[%c0_52, %c80] : memref<16x128xf32, #tpu.memory_space<vmem>>, vector<8x16xf32>
    tpu.vector_store %arg12[%c0_52, %c80], %146 {strides = array<i32>} : memref<16x128xf32, #tpu.memory_space<vmem>>, vector<8x16xf32>,
    %148 = vector.extract_strided_slice %43 {offsets = [0, 96], sizes = [8, 16], strides = [1, 1]} : vector<16x128xbf16> to vector<8x16xbf16>
    %149 = vector.extract_strided_slice %44 {offsets = [0, 96], sizes = [16, 16], strides = [1, 1]} : vector<32x128xbf16> to vector<16x16xbf16>
    %150 = vector.extract_strided_slice %45 {offsets = [0, 96], sizes = [16, 16], strides = [1, 1]} : vector<32x128xbf16> to vector<16x16xbf16>
    %cst_53 = arith.constant dense<0.000000e+00> : vector<8x16xf32>
    %151 = tpu.matmul %148, %149, %cst_53 {dimension_numbers = #tpu.dot_dimension_numbers<[1], [1], [0], [0], [0, 0, 1, 0], [], []>} : vector<8x16xbf16>, vector<16x16xbf16>, vector<8x16xf32> -> vector<8x16xf32>
    %cst_54 = arith.constant dense<0xFF800000> : vector<8xf32>
    %152 = vector.multi_reduction <maximumf>, %151, %cst_54 [1] : vector<8x16xf32> to vector<8xf32>
    %153 = vector.shape_cast %152 : vector<8xf32> to vector<8x1xf32>
    %154 = vector.broadcast %153 : vector<8x1xf32> to vector<8x16xf32>
    %155 = arith.subf %151, %154 : vector<8x16xf32>
    %156 = math.exp %155 : vector<8x16xf32>
    %cst_55 = arith.constant dense<0.000000e+00> : vector<8xf32>
    %157 = vector.multi_reduction <add>, %156, %cst_55 [1] : vector<8x16xf32> to vector<8xf32>
    %158 = vector.shape_cast %157 : vector<8xf32> to vector<8x1xf32>
    %159 = tpu.reciprocal %158 {approx = true} : vector<8x1xf32> -> vector<8x1xf32>
    %160 = vector.broadcast %159 : vector<8x1xf32> to vector<8x16xf32>
    %161 = arith.mulf %156, %160 : vector<8x16xf32>
    %162 = arith.truncf %161 : vector<8x16xf32> to vector<8x16xbf16>
    %cst_56 = arith.constant dense<0.000000e+00> : vector<8x16xf32>
    %163 = tpu.matmul %162, %150, %cst_56 {dimension_numbers = #tpu.dot_dimension_numbers<[1], [0], [0], [1], [0, 0, 1, 1], [], []>} : vector<8x16xbf16>, vector<16x16xbf16>, vector<8x16xf32> -> vector<8x16xf32>
    %c0_57 = arith.constant 0 : index
    %c96 = arith.constant 96 : index
    %164 = vector.load %arg12[%c0_57, %c96] : memref<16x128xf32, #tpu.memory_space<vmem>>, vector<8x16xf32>
    tpu.vector_store %arg12[%c0_57, %c96], %163 {strides = array<i32>} : memref<16x128xf32, #tpu.memory_space<vmem>>, vector<8x16xf32>,
    %165 = vector.extract_strided_slice %43 {offsets = [0, 112], sizes = [8, 16], strides = [1, 1]} : vector<16x128xbf16> to vector<8x16xbf16>
    %166 = vector.extract_strided_slice %44 {offsets = [0, 112], sizes = [16, 16], strides = [1, 1]} : vector<32x128xbf16> to vector<16x16xbf16>
    %167 = vector.extract_strided_slice %45 {offsets = [0, 112], sizes = [16, 16], strides = [1, 1]} : vector<32x128xbf16> to vector<16x16xbf16>
    %cst_58 = arith.constant dense<0.000000e+00> : vector<8x16xf32>
    %168 = tpu.matmul %165, %166, %cst_58 {dimension_numbers = #tpu.dot_dimension_numbers<[1], [1], [0], [0], [0, 0, 1, 0], [], []>} : vector<8x16xbf16>, vector<16x16xbf16>, vector<8x16xf32> -> vector<8x16xf32>
    %cst_59 = arith.constant dense<0xFF800000> : vector<8xf32>
    %169 = vector.multi_reduction <maximumf>, %168, %cst_59 [1] : vector<8x16xf32> to vector<8xf32>
    %170 = vector.shape_cast %169 : vector<8xf32> to vector<8x1xf32>
    %171 = vector.broadcast %170 : vector<8x1xf32> to vector<8x16xf32>
    %172 = arith.subf %168, %171 : vector<8x16xf32>
    %173 = math.exp %172 : vector<8x16xf32>
    %cst_60 = arith.constant dense<0.000000e+00> : vector<8xf32>
    %174 = vector.multi_reduction <add>, %173, %cst_60 [1] : vector<8x16xf32> to vector<8xf32>
    %175 = vector.shape_cast %174 : vector<8xf32> to vector<8x1xf32>
    %176 = tpu.reciprocal %175 {approx = true} : vector<8x1xf32> -> vector<8x1xf32>
    %177 = vector.broadcast %176 : vector<8x1xf32> to vector<8x16xf32>
    %178 = arith.mulf %173, %177 : vector<8x16xf32>
    %179 = arith.truncf %178 : vector<8x16xf32> to vector<8x16xbf16>
    %cst_61 = arith.constant dense<0.000000e+00> : vector<8x16xf32>
    %180 = tpu.matmul %179, %167, %cst_61 {dimension_numbers = #tpu.dot_dimension_numbers<[1], [0], [0], [1], [0, 0, 1, 1], [], []>} : vector<8x16xbf16>, vector<16x16xbf16>, vector<8x16xf32> -> vector<8x16xf32>
    %c0_62 = arith.constant 0 : index
    %c112 = arith.constant 112 : index
    %181 = vector.load %arg12[%c0_62, %c112] : memref<16x128xf32, #tpu.memory_space<vmem>>, vector<8x16xf32>
    tpu.vector_store %arg12[%c0_62, %c112], %180 {strides = array<i32>} : memref<16x128xf32, #tpu.memory_space<vmem>>, vector<8x16xf32>,
    %182 = vector.extract_strided_slice %43 {offsets = [8, 0], sizes = [8, 16], strides = [1, 1]} : vector<16x128xbf16> to vector<8x16xbf16>
    %183 = vector.extract_strided_slice %44 {offsets = [16, 0], sizes = [16, 16], strides = [1, 1]} : vector<32x128xbf16> to vector<16x16xbf16>
    %184 = vector.extract_strided_slice %45 {offsets = [16, 0], sizes = [16, 16], strides = [1, 1]} : vector<32x128xbf16> to vector<16x16xbf16>
    %cst_63 = arith.constant dense<0.000000e+00> : vector<8x16xf32>
    %185 = tpu.matmul %182, %183, %cst_63 {dimension_numbers = #tpu.dot_dimension_numbers<[1], [1], [0], [0], [0, 0, 1, 0], [], []>} : vector<8x16xbf16>, vector<16x16xbf16>, vector<8x16xf32> -> vector<8x16xf32>
    %cst_64 = arith.constant dense<0xFF800000> : vector<8xf32>
    %186 = vector.multi_reduction <maximumf>, %185, %cst_64 [1] : vector<8x16xf32> to vector<8xf32>
    %187 = vector.shape_cast %186 : vector<8xf32> to vector<8x1xf32>
    %188 = vector.broadcast %187 : vector<8x1xf32> to vector<8x16xf32>
    %189 = arith.subf %185, %188 : vector<8x16xf32>
    %190 = math.exp %189 : vector<8x16xf32>
    %cst_65 = arith.constant dense<0.000000e+00> : vector<8xf32>
    %191 = vector.multi_reduction <add>, %190, %cst_65 [1] : vector<8x16xf32> to vector<8xf32>
    %192 = vector.shape_cast %191 : vector<8xf32> to vector<8x1xf32>
    %193 = tpu.reciprocal %192 {approx = true} : vector<8x1xf32> -> vector<8x1xf32>
    %194 = vector.broadcast %193 : vector<8x1xf32> to vector<8x16xf32>
    %195 = arith.mulf %190, %194 : vector<8x16xf32>
    %196 = arith.truncf %195 : vector<8x16xf32> to vector<8x16xbf16>
    %cst_66 = arith.constant dense<0.000000e+00> : vector<8x16xf32>
    %197 = tpu.matmul %196, %184, %cst_66 {dimension_numbers = #tpu.dot_dimension_numbers<[1], [0], [0], [1], [0, 0, 1, 1], [], []>} : vector<8x16xbf16>, vector<16x16xbf16>, vector<8x16xf32> -> vector<8x16xf32>
    %c8 = arith.constant 8 : index
    %c0_67 = arith.constant 0 : index
    %198 = vector.load %arg12[%c8, %c0_67] : memref<16x128xf32, #tpu.memory_space<vmem>>, vector<8x16xf32>
    tpu.vector_store %arg12[%c8, %c0_67], %197 {strides = array<i32>} : memref<16x128xf32, #tpu.memory_space<vmem>>, vector<8x16xf32>,
    %199 = vector.extract_strided_slice %43 {offsets = [8, 16], sizes = [8, 16], strides = [1, 1]} : vector<16x128xbf16> to vector<8x16xbf16>
    %200 = vector.extract_strided_slice %44 {offsets = [16, 16], sizes = [16, 16], strides = [1, 1]} : vector<32x128xbf16> to vector<16x16xbf16>
    %201 = vector.extract_strided_slice %45 {offsets = [16, 16], sizes = [16, 16], strides = [1, 1]} : vector<32x128xbf16> to vector<16x16xbf16>
    %cst_68 = arith.constant dense<0.000000e+00> : vector<8x16xf32>
    %202 = tpu.matmul %199, %200, %cst_68 {dimension_numbers = #tpu.dot_dimension_numbers<[1], [1], [0], [0], [0, 0, 1, 0], [], []>} : vector<8x16xbf16>, vector<16x16xbf16>, vector<8x16xf32> -> vector<8x16xf32>
    %cst_69 = arith.constant dense<0xFF800000> : vector<8xf32>
    %203 = vector.multi_reduction <maximumf>, %202, %cst_69 [1] : vector<8x16xf32> to vector<8xf32>
    %204 = vector.shape_cast %203 : vector<8xf32> to vector<8x1xf32>
    %205 = vector.broadcast %204 : vector<8x1xf32> to vector<8x16xf32>
    %206 = arith.subf %202, %205 : vector<8x16xf32>
    %207 = math.exp %206 : vector<8x16xf32>
    %cst_70 = arith.constant dense<0.000000e+00> : vector<8xf32>
    %208 = vector.multi_reduction <add>, %207, %cst_70 [1] : vector<8x16xf32> to vector<8xf32>
    %209 = vector.shape_cast %208 : vector<8xf32> to vector<8x1xf32>
    %210 = tpu.reciprocal %209 {approx = true} : vector<8x1xf32> -> vector<8x1xf32>
    %211 = vector.broadcast %210 : vector<8x1xf32> to vector<8x16xf32>
    %212 = arith.mulf %207, %211 : vector<8x16xf32>
    %213 = arith.truncf %212 : vector<8x16xf32> to vector<8x16xbf16>
    %cst_71 = arith.constant dense<0.000000e+00> : vector<8x16xf32>
    %214 = tpu.matmul %213, %201, %cst_71 {dimension_numbers = #tpu.dot_dimension_numbers<[1], [0], [0], [1], [0, 0, 1, 1], [], []>} : vector<8x16xbf16>, vector<16x16xbf16>, vector<8x16xf32> -> vector<8x16xf32>
    %c8_72 = arith.constant 8 : index
    %c16_73 = arith.constant 16 : index
    %215 = vector.load %arg12[%c8_72, %c16_73] : memref<16x128xf32, #tpu.memory_space<vmem>>, vector<8x16xf32>
    tpu.vector_store %arg12[%c8_72, %c16_73], %214 {strides = array<i32>} : memref<16x128xf32, #tpu.memory_space<vmem>>, vector<8x16xf32>,
    %216 = vector.extract_strided_slice %43 {offsets = [8, 32], sizes = [8, 16], strides = [1, 1]} : vector<16x128xbf16> to vector<8x16xbf16>
    %217 = vector.extract_strided_slice %44 {offsets = [16, 32], sizes = [16, 16], strides = [1, 1]} : vector<32x128xbf16> to vector<16x16xbf16>
    %218 = vector.extract_strided_slice %45 {offsets = [16, 32], sizes = [16, 16], strides = [1, 1]} : vector<32x128xbf16> to vector<16x16xbf16>
    %cst_74 = arith.constant dense<0.000000e+00> : vector<8x16xf32>
    %219 = tpu.matmul %216, %217, %cst_74 {dimension_numbers = #tpu.dot_dimension_numbers<[1], [1], [0], [0], [0, 0, 1, 0], [], []>} : vector<8x16xbf16>, vector<16x16xbf16>, vector<8x16xf32> -> vector<8x16xf32>
    %cst_75 = arith.constant dense<0xFF800000> : vector<8xf32>
    %220 = vector.multi_reduction <maximumf>, %219, %cst_75 [1] : vector<8x16xf32> to vector<8xf32>
    %221 = vector.shape_cast %220 : vector<8xf32> to vector<8x1xf32>
    %222 = vector.broadcast %221 : vector<8x1xf32> to vector<8x16xf32>
    %223 = arith.subf %219, %222 : vector<8x16xf32>
    %224 = math.exp %223 : vector<8x16xf32>
    %cst_76 = arith.constant dense<0.000000e+00> : vector<8xf32>
    %225 = vector.multi_reduction <add>, %224, %cst_76 [1] : vector<8x16xf32> to vector<8xf32>
    %226 = vector.shape_cast %225 : vector<8xf32> to vector<8x1xf32>
    %227 = tpu.reciprocal %226 {approx = true} : vector<8x1xf32> -> vector<8x1xf32>
    %228 = vector.broadcast %227 : vector<8x1xf32> to vector<8x16xf32>
    %229 = arith.mulf %224, %228 : vector<8x16xf32>
    %230 = arith.truncf %229 : vector<8x16xf32> to vector<8x16xbf16>
    %cst_77 = arith.constant dense<0.000000e+00> : vector<8x16xf32>
    %231 = tpu.matmul %230, %218, %cst_77 {dimension_numbers = #tpu.dot_dimension_numbers<[1], [0], [0], [1], [0, 0, 1, 1], [], []>} : vector<8x16xbf16>, vector<16x16xbf16>, vector<8x16xf32> -> vector<8x16xf32>
    %c8_78 = arith.constant 8 : index
    %c32_79 = arith.constant 32 : index
    %232 = vector.load %arg12[%c8_78, %c32_79] : memref<16x128xf32, #tpu.memory_space<vmem>>, vector<8x16xf32>
    tpu.vector_store %arg12[%c8_78, %c32_79], %231 {strides = array<i32>} : memref<16x128xf32, #tpu.memory_space<vmem>>, vector<8x16xf32>,
    %233 = vector.extract_strided_slice %43 {offsets = [8, 48], sizes = [8, 16], strides = [1, 1]} : vector<16x128xbf16> to vector<8x16xbf16>
    %234 = vector.extract_strided_slice %44 {offsets = [16, 48], sizes = [16, 16], strides = [1, 1]} : vector<32x128xbf16> to vector<16x16xbf16>
    %235 = vector.extract_strided_slice %45 {offsets = [16, 48], sizes = [16, 16], strides = [1, 1]} : vector<32x128xbf16> to vector<16x16xbf16>
    %cst_80 = arith.constant dense<0.000000e+00> : vector<8x16xf32>
    %236 = tpu.matmul %233, %234, %cst_80 {dimension_numbers = #tpu.dot_dimension_numbers<[1], [1], [0], [0], [0, 0, 1, 0], [], []>} : vector<8x16xbf16>, vector<16x16xbf16>, vector<8x16xf32> -> vector<8x16xf32>
    %cst_81 = arith.constant dense<0xFF800000> : vector<8xf32>
    %237 = vector.multi_reduction <maximumf>, %236, %cst_81 [1] : vector<8x16xf32> to vector<8xf32>
    %238 = vector.shape_cast %237 : vector<8xf32> to vector<8x1xf32>
    %239 = vector.broadcast %238 : vector<8x1xf32> to vector<8x16xf32>
    %240 = arith.subf %236, %239 : vector<8x16xf32>
    %241 = math.exp %240 : vector<8x16xf32>
    %cst_82 = arith.constant dense<0.000000e+00> : vector<8xf32>
    %242 = vector.multi_reduction <add>, %241, %cst_82 [1] : vector<8x16xf32> to vector<8xf32>
    %243 = vector.shape_cast %242 : vector<8xf32> to vector<8x1xf32>
    %244 = tpu.reciprocal %243 {approx = true} : vector<8x1xf32> -> vector<8x1xf32>
    %245 = vector.broadcast %244 : vector<8x1xf32> to vector<8x16xf32>
    %246 = arith.mulf %241, %245 : vector<8x16xf32>
    %247 = arith.truncf %246 : vector<8x16xf32> to vector<8x16xbf16>
    %cst_83 = arith.constant dense<0.000000e+00> : vector<8x16xf32>
    %248 = tpu.matmul %247, %235, %cst_83 {dimension_numbers = #tpu.dot_dimension_numbers<[1], [0], [0], [1], [0, 0, 1, 1], [], []>} : vector<8x16xbf16>, vector<16x16xbf16>, vector<8x16xf32> -> vector<8x16xf32>
    %c8_84 = arith.constant 8 : index
    %c48_85 = arith.constant 48 : index
    %249 = vector.load %arg12[%c8_84, %c48_85] : memref<16x128xf32, #tpu.memory_space<vmem>>, vector<8x16xf32>
    tpu.vector_store %arg12[%c8_84, %c48_85], %248 {strides = array<i32>} : memref<16x128xf32, #tpu.memory_space<vmem>>, vector<8x16xf32>,
    %250 = vector.extract_strided_slice %43 {offsets = [8, 64], sizes = [8, 16], strides = [1, 1]} : vector<16x128xbf16> to vector<8x16xbf16>
    %251 = vector.extract_strided_slice %44 {offsets = [16, 64], sizes = [16, 16], strides = [1, 1]} : vector<32x128xbf16> to vector<16x16xbf16>
    %252 = vector.extract_strided_slice %45 {offsets = [16, 64], sizes = [16, 16], strides = [1, 1]} : vector<32x128xbf16> to vector<16x16xbf16>
    %cst_86 = arith.constant dense<0.000000e+00> : vector<8x16xf32>
    %253 = tpu.matmul %250, %251, %cst_86 {dimension_numbers = #tpu.dot_dimension_numbers<[1], [1], [0], [0], [0, 0, 1, 0], [], []>} : vector<8x16xbf16>, vector<16x16xbf16>, vector<8x16xf32> -> vector<8x16xf32>
    %cst_87 = arith.constant dense<0xFF800000> : vector<8xf32>
    %254 = vector.multi_reduction <maximumf>, %253, %cst_87 [1] : vector<8x16xf32> to vector<8xf32>
    %255 = vector.shape_cast %254 : vector<8xf32> to vector<8x1xf32>
    %256 = vector.broadcast %255 : vector<8x1xf32> to vector<8x16xf32>
    %257 = arith.subf %253, %256 : vector<8x16xf32>
    %258 = math.exp %257 : vector<8x16xf32>
    %cst_88 = arith.constant dense<0.000000e+00> : vector<8xf32>
    %259 = vector.multi_reduction <add>, %258, %cst_88 [1] : vector<8x16xf32> to vector<8xf32>
    %260 = vector.shape_cast %259 : vector<8xf32> to vector<8x1xf32>
    %261 = tpu.reciprocal %260 {approx = true} : vector<8x1xf32> -> vector<8x1xf32>
    %262 = vector.broadcast %261 : vector<8x1xf32> to vector<8x16xf32>
    %263 = arith.mulf %258, %262 : vector<8x16xf32>
    %264 = arith.truncf %263 : vector<8x16xf32> to vector<8x16xbf16>
    %cst_89 = arith.constant dense<0.000000e+00> : vector<8x16xf32>
    %265 = tpu.matmul %264, %252, %cst_89 {dimension_numbers = #tpu.dot_dimension_numbers<[1], [0], [0], [1], [0, 0, 1, 1], [], []>} : vector<8x16xbf16>, vector<16x16xbf16>, vector<8x16xf32> -> vector<8x16xf32>
    %c8_90 = arith.constant 8 : index
    %c64_91 = arith.constant 64 : index
    %266 = vector.load %arg12[%c8_90, %c64_91] : memref<16x128xf32, #tpu.memory_space<vmem>>, vector<8x16xf32>
    tpu.vector_store %arg12[%c8_90, %c64_91], %265 {strides = array<i32>} : memref<16x128xf32, #tpu.memory_space<vmem>>, vector<8x16xf32>,
    %267 = vector.extract_strided_slice %43 {offsets = [8, 80], sizes = [8, 16], strides = [1, 1]} : vector<16x128xbf16> to vector<8x16xbf16>
    %268 = vector.extract_strided_slice %44 {offsets = [16, 80], sizes = [16, 16], strides = [1, 1]} : vector<32x128xbf16> to vector<16x16xbf16>
    %269 = vector.extract_strided_slice %45 {offsets = [16, 80], sizes = [16, 16], strides = [1, 1]} : vector<32x128xbf16> to vector<16x16xbf16>
    %cst_92 = arith.constant dense<0.000000e+00> : vector<8x16xf32>
    %270 = tpu.matmul %267, %268, %cst_92 {dimension_numbers = #tpu.dot_dimension_numbers<[1], [1], [0], [0], [0, 0, 1, 0], [], []>} : vector<8x16xbf16>, vector<16x16xbf16>, vector<8x16xf32> -> vector<8x16xf32>
    %cst_93 = arith.constant dense<0xFF800000> : vector<8xf32>
    %271 = vector.multi_reduction <maximumf>, %270, %cst_93 [1] : vector<8x16xf32> to vector<8xf32>
    %272 = vector.shape_cast %271 : vector<8xf32> to vector<8x1xf32>
    %273 = vector.broadcast %272 : vector<8x1xf32> to vector<8x16xf32>
    %274 = arith.subf %270, %273 : vector<8x16xf32>
    %275 = math.exp %274 : vector<8x16xf32>
    %cst_94 = arith.constant dense<0.000000e+00> : vector<8xf32>
    %276 = vector.multi_reduction <add>, %275, %cst_94 [1] : vector<8x16xf32> to vector<8xf32>
    %277 = vector.shape_cast %276 : vector<8xf32> to vector<8x1xf32>
    %278 = tpu.reciprocal %277 {approx = true} : vector<8x1xf32> -> vector<8x1xf32>
    %279 = vector.broadcast %278 : vector<8x1xf32> to vector<8x16xf32>
    %280 = arith.mulf %275, %279 : vector<8x16xf32>
    %281 = arith.truncf %280 : vector<8x16xf32> to vector<8x16xbf16>
    %cst_95 = arith.constant dense<0.000000e+00> : vector<8x16xf32>
    %282 = tpu.matmul %281, %269, %cst_95 {dimension_numbers = #tpu.dot_dimension_numbers<[1], [0], [0], [1], [0, 0, 1, 1], [], []>} : vector<8x16xbf16>, vector<16x16xbf16>, vector<8x16xf32> -> vector<8x16xf32>
    %c8_96 = arith.constant 8 : index
    %c80_97 = arith.constant 80 : index
    %283 = vector.load %arg12[%c8_96, %c80_97] : memref<16x128xf32, #tpu.memory_space<vmem>>, vector<8x16xf32>
    tpu.vector_store %arg12[%c8_96, %c80_97], %282 {strides = array<i32>} : memref<16x128xf32, #tpu.memory_space<vmem>>, vector<8x16xf32>,
    %284 = vector.extract_strided_slice %43 {offsets = [8, 96], sizes = [8, 16], strides = [1, 1]} : vector<16x128xbf16> to vector<8x16xbf16>
    %285 = vector.extract_strided_slice %44 {offsets = [16, 96], sizes = [16, 16], strides = [1, 1]} : vector<32x128xbf16> to vector<16x16xbf16>
    %286 = vector.extract_strided_slice %45 {offsets = [16, 96], sizes = [16, 16], strides = [1, 1]} : vector<32x128xbf16> to vector<16x16xbf16>
    %cst_98 = arith.constant dense<0.000000e+00> : vector<8x16xf32>
    %287 = tpu.matmul %284, %285, %cst_98 {dimension_numbers = #tpu.dot_dimension_numbers<[1], [1], [0], [0], [0, 0, 1, 0], [], []>} : vector<8x16xbf16>, vector<16x16xbf16>, vector<8x16xf32> -> vector<8x16xf32>
    %cst_99 = arith.constant dense<0xFF800000> : vector<8xf32>
    %288 = vector.multi_reduction <maximumf>, %287, %cst_99 [1] : vector<8x16xf32> to vector<8xf32>
    %289 = vector.shape_cast %288 : vector<8xf32> to vector<8x1xf32>
    %290 = vector.broadcast %289 : vector<8x1xf32> to vector<8x16xf32>
    %291 = arith.subf %287, %290 : vector<8x16xf32>
    %292 = math.exp %291 : vector<8x16xf32>
    %cst_100 = arith.constant dense<0.000000e+00> : vector<8xf32>
    %293 = vector.multi_reduction <add>, %292, %cst_100 [1] : vector<8x16xf32> to vector<8xf32>
    %294 = vector.shape_cast %293 : vector<8xf32> to vector<8x1xf32>
    %295 = tpu.reciprocal %294 {approx = true} : vector<8x1xf32> -> vector<8x1xf32>
    %296 = vector.broadcast %295 : vector<8x1xf32> to vector<8x16xf32>
    %297 = arith.mulf %292, %296 : vector<8x16xf32>
    %298 = arith.truncf %297 : vector<8x16xf32> to vector<8x16xbf16>
    %cst_101 = arith.constant dense<0.000000e+00> : vector<8x16xf32>
    %299 = tpu.matmul %298, %286, %cst_101 {dimension_numbers = #tpu.dot_dimension_numbers<[1], [0], [0], [1], [0, 0, 1, 1], [], []>} : vector<8x16xbf16>, vector<16x16xbf16>, vector<8x16xf32> -> vector<8x16xf32>
    %c8_102 = arith.constant 8 : index
    %c96_103 = arith.constant 96 : index
    %300 = vector.load %arg12[%c8_102, %c96_103] : memref<16x128xf32, #tpu.memory_space<vmem>>, vector<8x16xf32>
    tpu.vector_store %arg12[%c8_102, %c96_103], %299 {strides = array<i32>} : memref<16x128xf32, #tpu.memory_space<vmem>>, vector<8x16xf32>,
    %301 = vector.extract_strided_slice %43 {offsets = [8, 112], sizes = [8, 16], strides = [1, 1]} : vector<16x128xbf16> to vector<8x16xbf16>
    %302 = vector.extract_strided_slice %44 {offsets = [16, 112], sizes = [16, 16], strides = [1, 1]} : vector<32x128xbf16> to vector<16x16xbf16>
    %303 = vector.extract_strided_slice %45 {offsets = [16, 112], sizes = [16, 16], strides = [1, 1]} : vector<32x128xbf16> to vector<16x16xbf16>
    %cst_104 = arith.constant dense<0.000000e+00> : vector<8x16xf32>
    %304 = tpu.matmul %301, %302, %cst_104 {dimension_numbers = #tpu.dot_dimension_numbers<[1], [1], [0], [0], [0, 0, 1, 0], [], []>} : vector<8x16xbf16>, vector<16x16xbf16>, vector<8x16xf32> -> vector<8x16xf32>
    %cst_105 = arith.constant dense<0xFF800000> : vector<8xf32>
    %305 = vector.multi_reduction <maximumf>, %304, %cst_105 [1] : vector<8x16xf32> to vector<8xf32>
    %306 = vector.shape_cast %305 : vector<8xf32> to vector<8x1xf32>
    %307 = vector.broadcast %306 : vector<8x1xf32> to vector<8x16xf32>
    %308 = arith.subf %304, %307 : vector<8x16xf32>
    %309 = math.exp %308 : vector<8x16xf32>
    %cst_106 = arith.constant dense<0.000000e+00> : vector<8xf32>
    %310 = vector.multi_reduction <add>, %309, %cst_106 [1] : vector<8x16xf32> to vector<8xf32>
    %311 = vector.shape_cast %310 : vector<8xf32> to vector<8x1xf32>
    %312 = tpu.reciprocal %311 {approx = true} : vector<8x1xf32> -> vector<8x1xf32>
    %313 = vector.broadcast %312 : vector<8x1xf32> to vector<8x16xf32>
    %314 = arith.mulf %309, %313 : vector<8x16xf32>
    %315 = arith.truncf %314 : vector<8x16xf32> to vector<8x16xbf16>
    %cst_107 = arith.constant dense<0.000000e+00> : vector<8x16xf32>
    %316 = tpu.matmul %315, %303, %cst_107 {dimension_numbers = #tpu.dot_dimension_numbers<[1], [0], [0], [1], [0, 0, 1, 1], [], []>} : vector<8x16xbf16>, vector<16x16xbf16>, vector<8x16xf32> -> vector<8x16xf32>
    %c8_108 = arith.constant 8 : index
    %c112_109 = arith.constant 112 : index
    %317 = vector.load %arg12[%c8_108, %c112_109] : memref<16x128xf32, #tpu.memory_space<vmem>>, vector<8x16xf32>
    tpu.vector_store %arg12[%c8_108, %c112_109], %316 {strides = array<i32>} : memref<16x128xf32, #tpu.memory_space<vmem>>, vector<8x16xf32>,
    %c0_110 = arith.constant 0 : index
    %c0_111 = arith.constant 0 : index
    %318 = vector.load %arg12[%c0_110, %c0_111] : memref<16x128xf32, #tpu.memory_space<vmem>>, vector<16x128xf32>
    %319 = arith.truncf %318 : vector<16x128xf32> to vector<16x128xbf16>
    %c0_112 = arith.constant 0 : index
    %c0_113 = arith.constant 0 : index
    %320 = vector.load %arg6[%c0_112, %c0_113] : memref<128x128xbf16, #tpu.memory_space<vmem>>, vector<128x128xbf16>
    %cst_114 = arith.constant dense<0.000000e+00> : vector<16x128xf32>
    %321 = tpu.matmul %319, %320, %cst_114 {dimension_numbers = #tpu.dot_dimension_numbers<[1], [0], [0], [1], [0, 0, 1, 1], [], []>} : vector<16x128xbf16>, vector<128x128xbf16>, vector<16x128xf32> -> vector<16x128xf32>
    %c5 = arith.constant 5 : index
    %c0_115 = arith.constant 0 : index
    %322 = vector.load %arg9[%c5, %c0_115] : memref<9x128xf32, #tpu.memory_space<vmem>>, vector<1x128xf32>
    %323 = vector.broadcast %322 : vector<1x128xf32> to vector<16x128xf32>
    %324 = arith.addf %321, %323 : vector<16x128xf32>
    %c6 = arith.constant 6 : index
    %c0_116 = arith.constant 0 : index
    %325 = vector.load %arg9[%c6, %c0_116] : memref<9x128xf32, #tpu.memory_space<vmem>>, vector<1x128xf32>
    %c7 = arith.constant 7 : index
    %c0_117 = arith.constant 0 : index
    %326 = vector.load %arg9[%c7, %c0_117] : memref<9x128xf32, #tpu.memory_space<vmem>>, vector<1x128xf32>
    %cst_118 = arith.constant dense<0.000000e+00> : vector<16xf32>
    %327 = vector.multi_reduction <add>, %324, %cst_118 [1] : vector<16x128xf32> to vector<16xf32>
    %328 = vector.shape_cast %327 : vector<16xf32> to vector<16x1xf32>
    %cst_119 = arith.constant 1.280000e+02 : f32
    %329 = vector.broadcast %cst_119 : f32 to vector<16x1xf32>
    %330 = arith.divf %328, %329 : vector<16x1xf32>
    %331 = vector.broadcast %330 : vector<16x1xf32> to vector<16x128xf32>
    %332 = arith.subf %324, %331 : vector<16x128xf32>
    %333 = arith.mulf %332, %332 : vector<16x128xf32>
    %cst_120 = arith.constant dense<0.000000e+00> : vector<16xf32>
    %334 = vector.multi_reduction <add>, %333, %cst_120 [1] : vector<16x128xf32> to vector<16xf32>
    %335 = vector.shape_cast %334 : vector<16xf32> to vector<16x1xf32>
    %cst_121 = arith.constant 1.280000e+02 : f32
    %336 = vector.broadcast %cst_121 : f32 to vector<16x1xf32>
    %337 = arith.divf %335, %336 : vector<16x1xf32>
    %338 = vector.broadcast %330 : vector<16x1xf32> to vector<16x128xf32>
    %339 = arith.subf %324, %338 : vector<16x128xf32>
    %cst_122 = arith.constant 9.99999974E-6 : f32
    %340 = vector.broadcast %cst_122 : f32 to vector<16x1xf32>
    %341 = arith.addf %337, %340 : vector<16x1xf32>
    %342 = math.rsqrt %341 : vector<16x1xf32>
    %343 = vector.broadcast %342 : vector<16x1xf32> to vector<16x128xf32>
    %344 = arith.mulf %339, %343 : vector<16x128xf32>
    %345 = vector.broadcast %325 : vector<1x128xf32> to vector<16x128xf32>
    %346 = arith.mulf %344, %345 : vector<16x128xf32>
    %347 = vector.broadcast %326 : vector<1x128xf32> to vector<16x128xf32>
    %348 = arith.addf %346, %347 : vector<16x128xf32>
    %349 = arith.truncf %348 : vector<16x128xf32> to vector<16x128xbf16>
    %c0_123 = arith.constant 0 : index
    %c0_124 = arith.constant 0 : index
    %350 = vector.load %arg7[%c0_123, %c0_124] : memref<128x256xbf16, #tpu.memory_space<vmem>>, vector<128x256xbf16>
    %cst_125 = arith.constant dense<0.000000e+00> : vector<16x256xf32>
    %351 = tpu.matmul %349, %350, %cst_125 {dimension_numbers = #tpu.dot_dimension_numbers<[1], [0], [0], [1], [0, 0, 1, 1], [], []>} : vector<16x128xbf16>, vector<128x256xbf16>, vector<16x256xf32> -> vector<16x256xf32>
    %c0_126 = arith.constant 0 : index
    %c0_127 = arith.constant 0 : index
    %352 = vector.load %arg10[%c0_126, %c0_127] : memref<1x256xf32, #tpu.memory_space<vmem>>, vector<1x256xf32>
    %353 = vector.broadcast %352 : vector<1x256xf32> to vector<16x256xf32>
    %354 = arith.addf %351, %353 : vector<16x256xf32>
    %cst_128 = arith.constant 5.000000e-01 : f32
    %355 = vector.broadcast %cst_128 : f32 to vector<16x256xf32>
    %356 = arith.mulf %355, %354 : vector<16x256xf32>
    %357 = arith.mulf %354, %354 : vector<16x256xf32>
    %358 = arith.mulf %357, %354 : vector<16x256xf32>
    %cst_129 = arith.constant 4.471500e-02 : f32
    %359 = vector.broadcast %cst_129 : f32 to vector<16x256xf32>
    %360 = arith.mulf %359, %358 : vector<16x256xf32>
    %361 = arith.addf %354, %360 : vector<16x256xf32>
    %cst_130 = arith.constant 0.797884583 : f32
    %362 = vector.broadcast %cst_130 : f32 to vector<16x256xf32>
    %363 = arith.mulf %362, %361 : vector<16x256xf32>
    %364 = math.tanh %363 : vector<16x256xf32>
    %cst_131 = arith.constant 1.000000e+00 : f32
    %365 = vector.broadcast %cst_131 : f32 to vector<16x256xf32>
    %366 = arith.addf %365, %364 : vector<16x256xf32>
    %367 = arith.mulf %356, %366 : vector<16x256xf32>
    %368 = arith.truncf %367 : vector<16x256xf32> to vector<16x256xbf16>
    %c0_132 = arith.constant 0 : index
    %c0_133 = arith.constant 0 : index
    %369 = vector.load %arg8[%c0_132, %c0_133] : memref<256x128xbf16, #tpu.memory_space<vmem>>, vector<256x128xbf16>
    %cst_134 = arith.constant dense<0.000000e+00> : vector<16x128xf32>
    %370 = tpu.matmul %368, %369, %cst_134 {dimension_numbers = #tpu.dot_dimension_numbers<[1], [0], [0], [1], [0, 0, 1, 1], [], []>} : vector<16x256xbf16>, vector<256x128xbf16>, vector<16x128xf32> -> vector<16x128xf32>
    %c8_135 = arith.constant 8 : index
    %c0_136 = arith.constant 0 : index
    %371 = vector.load %arg9[%c8_135, %c0_136] : memref<9x128xf32, #tpu.memory_space<vmem>>, vector<1x128xf32>
    %372 = vector.broadcast %371 : vector<1x128xf32> to vector<16x128xf32>
    %373 = arith.addf %370, %372 : vector<16x128xf32>
    %374 = arith.addf %373, %324 : vector<16x128xf32>
    %c0_137 = arith.constant 0 : index
    %c0_138 = arith.constant 0 : index
    %375 = vector.load %arg11[%c0_137, %c0_138] : memref<16x128xf32, #tpu.memory_space<vmem>>, vector<16x128xf32>
    tpu.vector_store %arg11[%c0_137, %c0_138], %374 {strides = array<i32>} : memref<16x128xf32, #tpu.memory_space<vmem>>, vector<16x128xf32>,
    return
  }
  func.func @transform_0(%arg0: i32) -> (i32, i32) {
    %c0_i32 = arith.constant 0 : i32
    %c0_i32_0 = arith.constant 0 : i32
    return %arg0, %c0_i32 : i32, i32
  }
  func.func @transform_1(%arg0: i32) -> (i32, i32) {
    %c1_i32 = arith.constant 1 : i32
    %c0_i32 = arith.constant 0 : i32
    %0 = arith.cmpi eq, %c1_i32, %c0_i32 : i32
    %c1_i32_0 = arith.constant 1 : i32
    %1 = arith.select %0, %c1_i32_0, %c1_i32 : i32
    %2 = arith.remsi %arg0, %1 : i32
    %c0_i32_1 = arith.constant 0 : i32
    %3 = arith.cmpi ne, %2, %c0_i32_1 : i32
    %c0_i32_2 = arith.constant 0 : i32
    %4 = arith.cmpi slt, %2, %c0_i32_2 : i32
    %c0_i32_3 = arith.constant 0 : i32
    %5 = arith.cmpi slt, %1, %c0_i32_3 : i32
    %6 = arith.xori %4, %5 : i1
    %7 = arith.andi %6, %3 : i1
    %8 = arith.addi %2, %1 : i32
    %9 = arith.select %7, %8, %2 : i32
    %c0_i32_4 = arith.constant 0 : i32
    %c0_i32_5 = arith.constant 0 : i32
    return %9, %c0_i32_4 : i32, i32
  }
  func.func @transform_2(%arg0: i32) -> (i32, i32) {
    %c0_i32 = arith.constant 0 : i32
    %c0_i32_0 = arith.constant 0 : i32
    %c0_i32_1 = arith.constant 0 : i32
    return %c0_i32, %c0_i32_0 : i32, i32
  }
  func.func @transform_3(%arg0: i32) -> (i32, i32) {
    %c0_i32 = arith.constant 0 : i32
    %c0_i32_0 = arith.constant 0 : i32
    %c0_i32_1 = arith.constant 0 : i32
    return %c0_i32, %c0_i32_0 : i32, i32
  }
  func.func @transform_4(%arg0: i32) -> (i32, i32) {
    %c0_i32 = arith.constant 0 : i32
    %c0_i32_0 = arith.constant 0 : i32
    %c0_i32_1 = arith.constant 0 : i32
    return %c0_i32, %c0_i32_0 : i32, i32
  }
  func.func @transform_5(%arg0: i32) -> (i32, i32) {
    %c0_i32 = arith.constant 0 : i32
    %c0_i32_0 = arith.constant 0 : i32
    %c0_i32_1 = arith.constant 0 : i32
    return %c0_i32, %c0_i32_0 : i32, i32
  }
  func.func @transform_6(%arg0: i32) -> (i32, i32) {
    %c0_i32 = arith.constant 0 : i32
    %c0_i32_0 = arith.constant 0 : i32
    %c0_i32_1 = arith.constant 0 : i32
    return %c0_i32, %c0_i32_0 : i32, i32
  }
  func.func @transform_7(%arg0: i32) -> (i32, i32) {
    %c0_i32 = arith.constant 0 : i32
    %c0_i32_0 = arith.constant 0 : i32
    %c0_i32_1 = arith.constant 0 : i32
    return %c0_i32, %c0_i32_0 : i32, i32
  }
  func.func @transform_8(%arg0: i32) -> (i32, i32) {
    %c0_i32 = arith.constant 0 : i32
    %c0_i32_0 = arith.constant 0 : i32
    %c0_i32_1 = arith.constant 0 : i32
    return %c0_i32, %c0_i32_0 : i32, i32
  }
  func.func @transform_9(%arg0: i32) -> (i32, i32) {
    %c0_i32 = arith.constant 0 : i32
    %c0_i32_0 = arith.constant 0 : i32
    %c0_i32_1 = arith.constant 0 : i32
    return %c0_i32, %c0_i32_0 : i32, i32
  }
  func.func @transform_10(%arg0: i32) -> (i32, i32) {
    %c0_i32 = arith.constant 0 : i32
    %c0_i32_0 = arith.constant 0 : i32
    return %arg0, %c0_i32 : i32, i32
  }
}

</mosaic_0001>

<bundles_post_ra>
// kernel: direct_qformer_block.1
= control target key start
LH: loop header
LB: loop body
LE: loop exit
PB: predicated region body
PF: predicated region fallthrough
CT: control target
= control target key end

     0   :  { %15 = vsyncpa [#allocation4], 0  ;;  %s5069_s0 = inlined_call_operand.vmem [shape: f32[64,128], index: 0, kind: input, shape index: {}]   ;;  %s5070_s1 = inlined_call_operand.vmem [shape: f32[16,128], index: 1, kind: input, shape index: {}]   ;;  %s5071_s2 = inlined_call_operand.hbm [shape: bf16[128,128], index: 2, kind: input, shape index: {}]   ;;  %s5072_s3 = inlined_call_operand.hbm [shape: bf16[128,128], index: 3, kind: input, shape index: {}]   ;;  %s5073_s4 = inlined_call_operand.hbm [shape: bf16[128,128], index: 4, kind: input, shape index: {}]   ;;  %s5074_s5 = inlined_call_operand.hbm [shape: bf16[128,128], index: 5, kind: input, shape index: {}]   ;;  %s5075_s6 = inlined_call_operand.vmem [shape: bf16[128,256], index: 6, kind: input, shape index: {}]   ;;  %s5076_s7 = inlined_call_operand.hbm [shape: bf16[256,128], index: 7, kind: input, shape index: {}]   ;;  %s5077_s8 = inlined_call_operand.hbm [shape: f32[9,128], index: 8, kind: input, shape index: {}]   ;;  %s5078_s9 = inlined_call_operand.vmem [shape: f32[1,256], index: 9, kind: input, shape index: {}]   ;;  %s5079_s10 = inlined_call_operand.vmem [shape: f32[32,128], index: 10, kind: output, shape index: {}]  }
   0x1   :  { %16 = vsyncpa [#allocation6], 0 }
   0x2   :  { %17 = vsyncpa [#allocation9], 0 }
   0x3   :  { %18 = vsyncpa [#allocation12], 0  ;;  %s4338_s13 = smov 0  }
   0x4 LB: > { %s4344_s14 = sadd.s32 4294967295, %s4261_s13   ;;  %p3310_p0 = scmp.ge.s32.totalorder %s4261_s13, 1  ;;  %s4261_s13 = sphi %s4338_s13, %s24_s13  }
   0x5   : > { %p270_p1 = scmp.lt.s32.totalorder %s4261_s13, 3  ;;  %p5080_p2 = scmp.eq.s32.totalorder %s4344_s14, 0 }
   0x6   : > { %s4263_s16 = smov [#allocation5]   ;;  %s4264_s18 = smov [#allocation8]  }
   0x7   : > { %p4349_p3 = pnand %p3310_p0, %p270_p1  ;;  %s298_s17 = sshll.u32 %s4263_s16, 4  ;;  %s4353_s17 = int_to_ptr.vmem [resolvable:$true] %s298_s17 }
   0x8   : > { %s324_s19 = sshll.u32 %s4264_s18, 4  ;;  %s4265_s21 = smov [#allocation3]   ;;  %s4357_s19 = int_to_ptr.vmem [resolvable:$true] %s324_s19 }
   0x9   : > { %s5082_s15 = scalar_select %p4349_p3, 1, 0 }
   0xa   : > { %p3856_p4 = pneg %p4349_p3  ;;  %s285_s22 = sshll.u32 %s4265_s21, 4  ;;  %s4365_s22 = int_to_ptr.vmem [resolvable:$true] %s285_s22 }
   0xb   : > { %s4266_s23 = smov [#allocation7]   ;;  %s4071_s27 = scalar_lea.hbm %s5072_s3, 1024 }
   0xc   : > { %p4361_p5 = pnand %p5080_p2, %p3856_p4  ;;  %s4367_s24 = sshll.u32 %s4266_s23, 4  ;;  %s312_s24 = int_to_ptr.vmem [resolvable:$true] %s4367_s24 }
   0xd   : > { %p4072_p6 = scmp.ne.s32.totalorder %s5072_s3, %s4071_s27  ;;  %p4078_p10 = scmp.lt.u32.totalorder %s4071_s27, %s5072_s3 }
   0xe   : > { %p4377_p7 = pneg %p4361_p5 }
  0x10   : > { %p4074_p8 = pnand %p4377_p7, %p4072_p6 }
  0x12   : > { %p4075_p9 = pneg %p4074_p8 }
  0x14   : > { %p4080_p11 = pnand %p4078_p10, %p4075_p9 }
  0x16   : > { %4083 = shalt.err (!%p4080_p11)
}
  0x17   : > { %s4084_s16 = scalar_lea.vmem %s4353_s17, 1024  ;;  %p4092_p1 = scmp.lt.s32.totalorder %s4353_s17, %s4353_s17 }
  0x18   : > { %p4085_p12 = scmp.ne.s32.totalorder %s4353_s17, %s4084_s16  ;;  %p4093_p4 = scmp.lt.s32.totalorder %s4084_s16, %s4084_s16 }
  0x1a   : > { %p4087_p13 = pnand %p4085_p12, %p4377_p7  ;;  %p4094_p6 = por %p4093_p4, %p4092_p1 }
  0x1c   : > { %p4088_p0 = pneg %p4087_p13 }
  0x1e   : > { %p4095_p8 = pnand %p4094_p6, %p4088_p0 }
  0x20   : > { %4098 = shalt.err (!%p4095_p8)
}
  0x21   : > { %s4267_s18 = smov 64   ;;  %s4268_s21 = smov 4  }
  0x22   : > { %3862 = dma.hbm_to_vmem [thread:$0]  (!%p4361_p5), %s5072_s3, 1024, %s4353_s17, [#allocation6], %s4267_s18, %s4267_s18, %s4268_s21  }
  0x23   : > { %s4099_s28 = scalar_lea.hbm %s5074_s5, 1024 }
  0x24   : > { %p4100_p9 = scmp.ne.s32.totalorder %s5074_s5, %s4099_s28  ;;  %p4106_p12 = scmp.lt.u32.totalorder %s4099_s28, %s5074_s5 }
  0x26   : > { %p4102_p10 = pnand %p4100_p9, %p4377_p7 }
  0x28   : > { %p4103_p11 = pneg %p4102_p10 }
  0x2a   : > { %p4108_p13 = pnand %p4106_p12, %p4103_p11 }
  0x2c   : > { %4111 = shalt.err (!%p4108_p13)
}
  0x2d   : > { %s4112_s17 = scalar_lea.vmem %s4357_s19, 1024  ;;  %p4120_p6 = scmp.lt.s32.totalorder %s4357_s19, %s4357_s19 }
  0x2e   : > { %p4113_p0 = scmp.ne.s32.totalorder %s4357_s19, %s4112_s17  ;;  %p4121_p8 = scmp.lt.s32.totalorder %s4112_s17, %s4112_s17 }
  0x30   : > { %p4115_p1 = pnand %p4113_p0, %p4377_p7  ;;  %p4122_p9 = por %p4121_p8, %p4120_p6 }
  0x32   : > { %p4116_p4 = pneg %p4115_p1 }
  0x34   : > { %p4123_p10 = pnand %p4122_p9, %p4116_p4 }
  0x36   : > { %4126 = shalt.err (!%p4123_p10)
}
  0x37   : > { %3868 = dma.hbm_to_vmem [thread:$0]  (!%p4361_p5), %s5074_s5, 1024, %s4357_s19, [#allocation9], %s4267_s18, %s4267_s18, %s4268_s21  }
  0x38   : > { %s4127_s28 = scalar_lea.hbm %s5071_s2, 1024 }
  0x39   : > { %p4128_p11 = scmp.ne.s32.totalorder %s5071_s2, %s4127_s28  ;;  %p4134_p0 = scmp.lt.u32.totalorder %s4127_s28, %s5071_s2 }
  0x3b   : > { %p4130_p12 = pnand %p4128_p11, %p4377_p7 }
  0x3d   : > { %p4131_p13 = pneg %p4130_p12 }
  0x3f   : > { %p4136_p1 = pnand %p4134_p0, %p4131_p13 }
  0x41   : > { %4139 = shalt.err (!%p4136_p1)
}
  0x42   : > { %s4140_s19 = scalar_lea.vmem %s4365_s22, 1024  ;;  %p4148_p9 = scmp.lt.s32.totalorder %s4365_s22, %s4365_s22 }
  0x43   : > { %p4141_p4 = scmp.ne.s32.totalorder %s4365_s22, %s4140_s19  ;;  %p4149_p10 = scmp.lt.s32.totalorder %s4140_s19, %s4140_s19 }
  0x45   : > { %p4143_p6 = pnand %p4141_p4, %p4377_p7  ;;  %p4150_p11 = por %p4149_p10, %p4148_p9 }
  0x47   : > { %p4144_p8 = pneg %p4143_p6 }
  0x49   : > { %p4151_p12 = pnand %p4150_p11, %p4144_p8 }
  0x4b   : > { %4154 = shalt.err (!%p4151_p12)
}
  0x4c   : > { %3859 = dma.hbm_to_vmem [thread:$0]  (!%p4361_p5), %s5071_s2, 1024, %s4365_s22, [#allocation4], %s4267_s18, %s4267_s18, %s4268_s21  }
  0x4d   : > { %s4155_s27 = scalar_lea.hbm %s5073_s4, 1024 }
  0x4e   : > { %p4156_p13 = scmp.ne.s32.totalorder %s5073_s4, %s4155_s27  ;;  %p4162_p4 = scmp.lt.u32.totalorder %s4155_s27, %s5073_s4 }
  0x50   : > { %p4158_p0 = pnand %p4156_p13, %p4377_p7 }
  0x52   : > { %p4159_p1 = pneg %p4158_p0 }
  0x54   : > { %p4164_p6 = pnand %p4162_p4, %p4159_p1 }
  0x56   : > { %4167 = shalt.err (!%p4164_p6)
}
  0x57   : > { %s4168_s16 = scalar_lea.vmem %s312_s24, 1024  ;;  %p4176_p11 = scmp.lt.s32.totalorder %s312_s24, %s312_s24 }
  0x58   : > { %p4169_p8 = scmp.ne.s32.totalorder %s312_s24, %s4168_s16  ;;  %p4177_p12 = scmp.lt.s32.totalorder %s4168_s16, %s4168_s16 }
  0x5a   : > { %p4171_p9 = pnand %p4169_p8, %p4377_p7  ;;  %p4178_p2 = por %p4177_p12, %p4176_p11 }
  0x5c   : > { %p4172_p10 = pneg %p4171_p9 }
  0x5e   : > { %p4179_p3 = pnand %p4178_p2, %p4172_p10 }
  0x60   : > { %4182 = shalt.err (!%p4179_p3)
}
  0x61   : > { %3865 = dma.hbm_to_vmem [thread:$0]  (!%p4361_p5), %s5073_s4, 1024, %s312_s24, [#allocation6], %s4267_s18, %s4267_s18, %s4268_s21  }
  0x62   : > { %s4269_s17 = smov [#allocation10]   ;;  %s4270_s25 = smov [#allocation11]  }
  0x63   : > { %s340_s23 = sshll.u32 %s4269_s17, 4  ;;  %s353_s26 = sshll.u32 %s4270_s25, 4  ;;  %s341_s23 = int_to_ptr.vmem [resolvable:$true] %s340_s23  ;;  %s354_s26 = int_to_ptr.vmem [resolvable:$true] %s353_s26 }
  0x64   : > { %s4183_s29 = scalar_lea.hbm %s5076_s7, 2048 }
  0x65   : > { %p4184_p2 = scmp.ne.s32.totalorder %s5076_s7, %s4183_s29  ;;  %p4190_p0 = scmp.lt.u32.totalorder %s4183_s29, %s5076_s7 }
  0x67   : > { %p4186_p3 = pnand %p4184_p2, %p4377_p7 }
  0x69   : > { %p4187_p13 = pneg %p4186_p3 }
  0x6b   : > { %p4192_p1 = pnand %p4190_p0, %p4187_p13 }
  0x6d   : > { %4195 = shalt.err (!%p4192_p1)
}
  0x6e   : > { %s4196_s24 = scalar_lea.vmem %s341_s23, 2048  ;;  %p4204_p9 = scmp.lt.s32.totalorder %s341_s23, %s341_s23 }
  0x6f   : > { %p4197_p4 = scmp.ne.s32.totalorder %s341_s23, %s4196_s24  ;;  %p4205_p10 = scmp.lt.s32.totalorder %s4196_s24, %s4196_s24 }
  0x71   : > { %p4199_p6 = pnand %p4197_p4, %p4377_p7  ;;  %p4206_p11 = por %p4205_p10, %p4204_p9 }
  0x73   : > { %p4200_p8 = pneg %p4199_p6 }
  0x75   : > { %p4207_p12 = pnand %p4206_p11, %p4200_p8 }
  0x77   : > { %4210 = shalt.err (!%p4207_p12)
}
  0x78   : > { %3871 = dma.hbm_to_vmem [thread:$0]  (!%p4361_p5), %s5076_s7, 2048, %s341_s23, [#allocation9], %s4267_s18, %s4267_s18, %s4268_s21  }
  0x79   : > { %s4211_s28 = scalar_lea.hbm %s5077_s8, 256 }
  0x7a   : > { %p4212_p2 = scmp.ne.s32.totalorder %s5077_s8, %s4211_s28  ;;  %p4218_p0 = scmp.lt.u32.totalorder %s4211_s28, %s5077_s8 }
  0x7c   : > { %p4214_p3 = pnand %p4212_p2, %p4377_p7 }
  0x7e   : > { %p4215_p13 = pneg %p4214_p3 }
  0x80   : > { %p4220_p1 = pnand %p4218_p0, %p4215_p13 }
  0x82   : > { %4223 = shalt.err (!%p4220_p1)
}
  0x83   : > { %s4224_s22 = scalar_lea.vmem %s354_s26, 256  ;;  %p4232_p9 = scmp.lt.s32.totalorder %s354_s26, %s354_s26 }
  0x84   : > { %p4225_p4 = scmp.ne.s32.totalorder %s354_s26, %s4224_s22  ;;  %p4233_p10 = scmp.lt.s32.totalorder %s4224_s22, %s4224_s22 }
  0x86   : > { %p4227_p6 = pnand %p4225_p4, %p4377_p7  ;;  %p4234_p11 = por %p4233_p10, %p4232_p9 }
  0x88   : > { %p4228_p8 = pneg %p4227_p6 }
  0x8a   : > { %p4235_p12 = pnand %p4234_p11, %p4228_p8 }
  0x8c   : > { %4238 = shalt.err (!%p4235_p12)
}
  0x8d   : > { %s4271_s18 = smov 128   ;;  %s4272_s21 = smov 8  }
  0x8e   : > { %3874 = dma.hbm_to_vmem [thread:$0]  (!%p4361_p5), %s5077_s8, 256, %s354_s26, [#allocation12], %s4271_s18, %s4271_s18, %s4272_s21  }
  0x8f   : > { %p5085_p2 = scmp.ne.s32.totalorder %s5082_s15, 0 }
  0x90   : > { %p5086_p3 = scmp.eq.s32.totalorder (!%p5085_p2), %s4344_s14, 0 }
  0x91   : > { %381 = sbr.rel (%p5085_p2) target bundleno = 4346 (0x10fa), region = 60 }
  0x98   : > { %4244 = dma.done.wait (%p5086_p3), [#allocation4], 1024   ;;  %p5087_p7 = pmov %p5086_p3 }
  0x99   : > { %p5088_p13 = pmov %p5086_p3 }
  0x9a   : > { %4246 = vsyncadd (%p5087_p7), [#allocation4], 4294966272 }
  0x9b   : > { %4248 = dma.done.wait (%p5088_p13), [#allocation6], 2048   ;;  %p5089_p0 = pmov %p5086_p3 }
  0x9d   : > { %4250 = vsyncadd (%p5089_p0), [#allocation6], 4294965248  ;;  %p5090_p1 = pmov %p5089_p0 }
  0x9e   : > { %p5091_p5 = pmov %p5089_p0 }
  0x9f   : > { %4252 = dma.done.wait (%p5090_p1), [#allocation9], 3072  }
  0xa0   : > { %4254 = vsyncadd (%p5091_p5), [#allocation9], 4294964224  ;;  %p5092_p4 = pmov %p5089_p0 }
  0xa1   : > { %p5093_p6 = pmov %p5089_p0 }
  0xa2   : > { %4256 = dma.done.wait (%p5092_p4), [#allocation12], 256  }
  0xa3   : > { %4258 = vsyncadd (%p5093_p6), [#allocation12], 4294967040  ;;  %s3325_s15 = sshll.u32 %s4344_s14, 2  ;;  %v3915_v4 = vld [vmem:[#allocation3] sm:$0xff]   ;;  %v4273_v5 = vmov 0.0   ;;  %vm4274_vm0 = vmmov 0  }
  0xa4   : > { %p440_p8 = scmp.lt.s32.totalorder %s3325_s15, 7  ;;  %3560 = vmatprep.subr.bf16.mxu0 %v4273_v5  ;;  %3576 = vmatprep.mubr.msk.bf16.mxu0 %vm4274_vm0, %v4273_v5  ;;  %v3916_v6 = vld [vmem:[#allocation3 + $0x8] sm:$0xff]   ;;  %v3923_v7 = vld [vmem:[#allocation5] sm:$0xff]   ;;  %v3917_v8 = vld [vmem:[#allocation3 + $0x10] sm:$0xff]   ;;  %vm875_vm1 = vcmask 130048   ;;  %s4275_s29 = smov 112  }
  0xa5   : > { %3561 = vmatpush3.bf16.msra.mxu0 %v3915_v4  ;;  %3580 = vmatprep.subr.bf16.mxu1 %v3923_v7  ;;  %v3918_v9 = vld [vmem:[#allocation3 + $0x18] sm:$0xff]   ;;  %v3919_v10 = vld [vmem:[#allocation3 + $0x20] sm:$0xff]   ;;  %v3920_v11 = vld [vmem:[#allocation3 + $0x28] sm:$0xff]   ;;  %s4276_s11 = smov 96   ;;  %s4277_s12 = smov 80   ;;  %vm1093_vm2 = vcmask 261248  }
  0xa6   : > { %s5095_s15 = smov (!%p440_p8, %s3325_s15), 7  ;;  %3562 = vmatprep.subr.bf16.mxu0 %v4273_v5  ;;  %3581 = vmatpush3.bf16.msra.mxu1 %v3923_v7  ;;  %v3921_v12 = vld [vmem:[#allocation3 + $0x30] sm:$0xff]   ;;  %v3922_v13 = vld [vmem:[#allocation3 + $0x38] sm:$0xff]   ;;  %v3924_v14 = vld [vmem:[#allocation7] sm:$0xff]   ;;  %s4278_s16 = smov 64   ;;  %vm1207_vm3 = vcmask 392448  }
  0xa7   : > { %s3326_s20 = sshll.u32 %s5095_s15, 3  ;;  %v456_v31 = vld [vmem:[%s5070_s1] sm:$0xff]  ;;  %v457_v32 = vld [vmem:[%s5070_s1 + $0x8] sm:$0xff]  ;;  %v3925_v34 = vld [vmem:[#allocation5 + $0x8] sm:$0xff]   ;;  %s4279_s22 = smov 48   ;;  %vm1321_vm4 = vcmask 523648  }
  0xa8   : > { %s443_s19 = scalar_lea.vmem %s5069_s0, %s3326_s20  ;;  %v521_v33 = vpack.c.bf16 %v457_v32, %v456_v31  ;;  %v3926_v35 = vld [vmem:[#allocation7 + $0x8] sm:$0xff]   ;;  %3582 = vmatprep.subr.bf16.mxu1 %v3925_v34  ;;  %v3927_v36 = vld [vmem:[#allocation5 + $0x10] sm:$0xff]   ;;  %v3929_v38 = vld [vmem:[#allocation5 + $0x18] sm:$0xff]   ;;  %s4280_s18 = smov 32   ;;  %vm1435_vm5 = vcmask 654848   ;;  %vm1549_vm6 = vcmask 786048  }
  0xa9   : > { %v452_v0 = vld [vmem:[%s443_s19] sm:$0xff]  ;;  %v454_v1 = vld [vmem:[%s443_s19 + $0x10] sm:$0xff]  ;;  %v453_v2 = vld [vmem:[%s443_s19 + $0x8] sm:$0xff]  ;;  %3563 = vmatpush3.bf16.msra.mxu0 %v3916_v6  ;;  %s4281_s21 = smov 16   ;;  %vm1663_vm7 = vcmask 917248   ;;  %vm1777_vm8 = vcmask 1048448  }
  0xaa   : > { %460 = vadd.xlane.f32.xlu0 %v452_v0  ;;  %464 = vadd.xlane.f32.xlu1 %v454_v1  ;;  %v455_v3 = vld [vmem:[%s443_s19 + $0x18] sm:$0xff]  ;;  %v3928_v37 = vld [vmem:[#allocation7 + $0x10] sm:$0xff]   ;;  %v3930_v39 = vld [vmem:[#allocation7 + $0x18] sm:$0xff]  }
  0xab   : > { %3564 = vmatprep.subr.bf16.mxu0 %v4273_v5  ;;  %3583 = vmatpush3.bf16.msra.mxu1 %v3925_v34  ;;  %v3931_v40 = vld [vmem:[#allocation5 + $0x20] sm:$0xff]   ;;  %v3933_v42 = vld [vmem:[#allocation5 + $0x28] sm:$0xff]   ;;  %v3935_v44 = vld [vmem:[#allocation5 + $0x30] sm:$0xff]  }
  0xac   : > { %3584 = vmatprep.subr.bf16.mxu1 %v3927_v36  ;;  %v3932_v41 = vld [vmem:[#allocation7 + $0x20] sm:$0xff]   ;;  %v3934_v43 = vld [vmem:[#allocation7 + $0x28] sm:$0xff]   ;;  %v3936_v45 = vld [vmem:[#allocation7 + $0x30] sm:$0xff]  }
  0xad   : > { %3565 = vmatpush3.bf16.msra.mxu0 %v3917_v8  ;;  %v3937_v46 = vld [vmem:[#allocation5 + $0x38] sm:$0xff]   ;;  %v3329_v62 = vld [vmem:[#allocation11] ss:$0 sm:$0xff] }
  0xae   : > { %462 = vadd.xlane.f32.xlu0 %v453_v2  ;;  %466 = vadd.xlane.f32.xlu1 %v455_v3  ;;  %v3938_v47 = vld [vmem:[#allocation7 + $0x38] sm:$0xff]  }
  0xaf   : > { %3566 = vmatprep.subr.bf16.mxu0 %v4273_v5  ;;  %3585 = vmatpush3.bf16.msra.mxu1 %v3927_v36 }
  0xb0   : > { %3586 = vmatprep.subr.bf16.mxu1 %v3929_v38 }
  0xb1   : > { %3567 = vmatpush3.bf16.msra.mxu0 %v3918_v9 }
  0xb2   : > { %3568 = vmatprep.subr.bf16.mxu0 %v4273_v5 }
  0xb3   : > { %3587 = vmatpush3.bf16.msra.mxu1 %v3929_v38 }
  0xb4   : > { %3588 = vmatprep.subr.bf16.mxu1 %v3931_v40 }
  0xb5   : > { %3569 = vmatpush3.bf16.msra.mxu0 %v3919_v10 }
  0xb6   : > { %3570 = vmatprep.subr.bf16.mxu0 %v4273_v5 }
  0xb7   : > { %3589 = vmatpush3.bf16.msra.mxu1 %v3931_v40 }
  0xb8   : > { %3590 = vmatprep.subr.bf16.mxu1 %v3933_v42 }
  0xb9   : > { %3571 = vmatpush3.bf16.msra.mxu0 %v3920_v11 }
  0xba   : > { %3572 = vmatprep.subr.bf16.mxu0 %v4273_v5 }
  0xbb   : > { %3591 = vmatpush3.bf16.msra.mxu1 %v3933_v42 }
  0xbc   : > { %3592 = vmatprep.subr.bf16.mxu1 %v3935_v44 }
  0xbd   : > { %3573 = vmatpush3.bf16.msra.mxu0 %v3921_v12 }
  0xbe   : > { %3574 = vmatprep.subr.bf16.mxu0 %v4273_v5 }
  0xbf   : > { %3593 = vmatpush3.bf16.msra.mxu1 %v3935_v44 }
  0xc0   : > { %3594 = vmatprep.subr.bf16.mxu1 %v3937_v46 }
  0xc1   : > { %3575 = vmatpush3.bf16.msra.mxu0 %v3922_v13 }
  0xc2   : > { %3600 = vmatprep.subr.bf16.mxu0 %v3924_v14 }
  0xc3   : > { %3595 = vmatpush3.bf16.msra.mxu1 %v3937_v46 }
  0xc4   : > { %3577 = vmatmul.mubr.bf16.vlgmr.msra.gmra.mrb[0].mxu0 %v521_v33  ;;  %3620 = vmatprep.subr.bf16.mxu1 %v4273_v5 }
  0xc5   : > { %3601 = vmatpush3.bf16.msra.mxu0 %v3924_v14 }
  0xc6   : > { %3602 = vmatprep.subr.bf16.mxu0 %v3926_v35 }
  0xc9   : > { %3603 = vmatpush3.bf16.msra.mxu0 %v3926_v35 }
  0xca   : > { %3604 = vmatprep.subr.bf16.mxu0 %v3928_v37 }
  0xcd   : > { %3605 = vmatpush3.bf16.msra.mxu0 %v3928_v37 }
  0xce   : > { %3606 = vmatprep.subr.bf16.mxu0 %v3930_v39 }
  0xd1   : > { %3607 = vmatpush3.bf16.msra.mxu0 %v3930_v39 }
  0xd2   : > { %3608 = vmatprep.subr.bf16.mxu0 %v3932_v41 }
  0xd5   : > { %3609 = vmatpush3.bf16.msra.mxu0 %v3932_v41 }
  0xd6   : > { %3610 = vmatprep.subr.bf16.mxu0 %v3934_v43 }
  0xd9   : > { %3611 = vmatpush3.bf16.msra.mxu0 %v3934_v43 }
  0xda   : > { %3612 = vmatprep.subr.bf16.mxu0 %v3936_v45 }
  0xdd   : > { %3613 = vmatpush3.bf16.msra.mxu0 %v3936_v45 }
  0xde   : > { %3614 = vmatprep.subr.bf16.mxu0 %v3938_v47 }
  0xe1   : > { %3615 = vmatpush3.bf16.msra.mxu0 %v3938_v47 }
  0xe2   : > { %3668 = vmatprep.subr.bf16.mxu0 %v4273_v5 }
 0x137   : > { %v461_v15 = vpop.xlane.xlu0 %460  ;;  %v465_v16 = vpop.xlane.xlu1 %464 }
 0x138   : > { %v469_v17 = vmul.f32 0.0078125, %v461_v15  ;;  %v471_v18 = vmul.f32 0.0078125, %v465_v16 }
 0x13a   : > { %v4546_v19 = vsub.f32 %v452_v0, %v469_v17  ;;  %v4548_v20 = vsub.f32 %v454_v1, %v471_v18  ;;  %v3331_v17 = vld [vmem:[#allocation11 + $0x2] ss:$0 sm:$0xff] }
 0x13b   : > { %v463_v21 = vpop.xlane.xlu0 %462  ;;  %v467_v22 = vpop.xlane.xlu1 %466 }
 0x13c   : > { %v470_v23 = vmul.f32 0.0078125, %v463_v21  ;;  %v477_v24 = vmul.f32 %v4546_v19, %v4546_v19  ;;  %v472_v25 = vmul.f32 0.0078125, %v467_v22  ;;  %v479_v28 = vmul.f32 %v4548_v20, %v4548_v20 }
 0x13e   : > { %v4552_v26 = vsub.f32 %v453_v2, %v470_v23  ;;  %481 = vadd.xlane.f32.xlu0 %v477_v24  ;;  %v4554_v27 = vsub.f32 %v455_v3, %v472_v25  ;;  %v3330_v3 = vld [vmem:[#allocation11 + $0x1] ss:$0 sm:$0xff]  ;;  %v3340_v25 = vld [vmem:[#allocation11 + $0x3] ss:$0 sm:$0xff] }
 0x140   : > { %v478_v29 = vmul.f32 %v4552_v26, %v4552_v26  ;;  %v480_v30 = vmul.f32 %v4554_v27, %v4554_v27 }
 0x142   : > { %485 = vadd.xlane.f32.xlu0 %v479_v28  ;;  %483 = vadd.xlane.f32.xlu1 %v478_v29 }
 0x146   : > { %487 = vadd.xlane.f32.xlu1 %v480_v30 }
 0x197   : > { %v627_v18 = vpop.f32.mrb[0].mxu0 }
 0x1cb   : > { %v482_v48 = vpop.xlane.xlu0 %481 }
 0x1cc   : > { %v489_v49 = vmul.f32 0.0078125, %v482_v48 }
 0x1ce   : > { %v493_v50 = vadd.f32 1e-05, %v489_v49 }
 0x1cf   : > { %v484_v51 = vpop.xlane.xlu1 %483  ;;  %v486_v52 = vpop.xlane.xlu0 %485 }
 0x1d0   : > { %3987 = vrsqrt.f32 %v493_v50  ;;  %v490_v53 = vmul.f32 0.0078125, %v484_v51  ;;  %v491_v54 = vmul.f32 0.0078125, %v486_v52 }
 0x1d2   : > { %v494_v55 = vadd.f32 1e-05, %v490_v53  ;;  %v495_v56 = vadd.f32 1e-05, %v491_v54 }
 0x1d3   : > { %v488_v57 = vpop.xlane.xlu1 %487 }
 0x1d4   : > { %3989 = vrsqrt.f32 %v494_v55  ;;  %v492_v58 = vmul.f32 0.0078125, %v488_v57 }
 0x1d5   : > { %3991 = vrsqrt.f32 %v495_v56 }
 0x1d6   : > { %v496_v59 = vadd.f32 1e-05, %v492_v58 }
 0x1d8   : > { %3993 = vrsqrt.f32 %v496_v59 }
 0x1da   : > { %v3988_v60 = vpop.eup %3987 }
 0x1db   : > { %v501_v61 = vmul.f32 %v3988_v60, %v4546_v19  ;;  %v628_v19 = vadd.f32 %v3331_v17, %v627_v18 }
 0x1dd   : > { %v509_v2 = vmul.f32 %v3329_v62, %v501_v61 }
 0x1de   : > { %v3990_v63 = vpop.eup %3989 }
 0x1df   : > { %v3992_v0 = vpop.eup %3991  ;;  %v502_v1 = vmul.f32 %v3990_v63, %v4552_v26  ;;  %v517_v8 = vadd.f32 %v3330_v3, %v509_v2  ;;  %v3349_v26 = vld [vmem:[#allocation11 + $0x4] ss:$0 sm:$0xff] }
 0x1e0   : > { %v503_v4 = vmul.f32 %v3992_v0, %v4548_v20  ;;  %v3578_v20 = vpop.f32.mrb[1].mxu0 }
 0x1e1   : > { %v510_v6 = vmul.f32 %v3329_v62, %v502_v1  ;;  %v630_v21 = vpop.f32.mrb[2].mxu0 }
 0x1e2   : > { %v3994_v7 = vpop.eup %3993  ;;  %v511_v11 = vmul.f32 %v3329_v62, %v503_v4  ;;  %v631_v22 = vadd.f32 %v3331_v17, %v630_v21  ;;  %v3579_v23 = vpop.f32.mrb[3].mxu0 }
 0x1e3   : > { %v518_v9 = vadd.f32 %v3330_v3, %v510_v6  ;;  %v504_v10 = vmul.f32 %v3994_v7, %v4554_v27 }
 0x1e4   : > { %v519_v14 = vadd.f32 %v3330_v3, %v511_v11  ;;  %v4578_v24 = vpack.c.bf16 %v631_v22, %v628_v19 }
 0x1e5   : > { %v522_v12 = vpack.c.bf16 %v518_v9, %v517_v8  ;;  %v512_v13 = vmul.f32 %v3329_v62, %v504_v10 }
 0x1e7   : > { %3596 = vmatprep.mubr.bf16.mxu1 %v522_v12  ;;  %3616 = vmatprep.mubr.bf16.mxu0 %v522_v12  ;;  %v520_v15 = vadd.f32 %v3330_v3, %v512_v13 }
 0x1e9   : > { %v523_v16 = vpack.c.bf16 %v520_v15, %v519_v14 }
 0x1eb   : > { %3597 = vmatmul.mubr.bf16.vlgmr.msra.gmra.mrb[0].mxu1 %v523_v16  ;;  %3617 = vmatmul.mubr.bf16.vlgmr.msra.gmra.mrb[4].mxu0 %v523_v16 }
 0x1ec   : > { %3622 = vmatprep.mubr.msk.bf16.mxu1 %vm4274_vm0, %v4273_v5  ;;  %3670 = vmatprep.mubr.msk.bf16.mxu0 %vm4274_vm0, %v4273_v5 }
 0x2be   : > { %v3598_v27 = vpop.f32.mrb[0].mxu1  ;;  %v3618_v28 = vpop.f32.mrb[4].mxu0 }
 0x2bf   : > { %v746_v29 = vadd.f32 %v3598_v27, %v3340_v25  ;;  %v864_v30 = vadd.f32 %v3618_v28, %v3349_v26  ;;  %v737_v31 = vpop.f32.mrb[1].mxu1  ;;  %v855_v32 = vpop.f32.mrb[5].mxu0 }
 0x2c0   : > { %v3599_v33 = vpop.f32.mrb[2].mxu1  ;;  %v3619_v34 = vpop.f32.mrb[6].mxu0  ;;  %v738_v39 = vadd.f32 %v3340_v25, %v737_v31  ;;  %v856_v40 = vadd.f32 %v3349_v26, %v855_v32 }
 0x2c1   : > { %v749_v35 = vadd.f32 %v3599_v33, %v3340_v25  ;;  %v867_v36 = vadd.f32 %v3619_v34, %v3349_v26  ;;  %v740_v37 = vpop.f32.mrb[3].mxu1  ;;  %v858_v38 = vpop.f32.mrb[7].mxu0  ;;  %v4645_v34 = vrot.slane %v4578_v24, 4 }
 0x2c2   : > { %v741_v41 = vadd.f32 %v3340_v25, %v740_v37  ;;  %v859_v42 = vadd.f32 %v3349_v26, %v858_v38 }
 0x2c3   : > { %v4580_v43 = vpack.c.bf16 %v749_v35, %v746_v29  ;;  %v4582_v44 = vpack.c.bf16 %v867_v36, %v864_v30 }
 0x2c4   : > { %v4584_v45 = vpack.c.bf16 %v741_v41, %v738_v39  ;;  %v4586_v46 = vpack.c.bf16 %v859_v42, %v856_v40 }
 0x2c6   : > { %v880_v47 = vsel %vm875_vm1, %v4584_v45, 0 }
 0x2c7   : > { %3621 = vmatpush3.bf16.xpose.msra.mxu1 %v880_v47 }
 0x2c8   : > { %3626 = vmatprep.subr.bf16.mxu1 %v4273_v5 }
 0x2ce   : > { %3623 = vmatmul.mubr.msk.bf16.vlgmr.msra.gmra.mrb[4].mxu1 %vm875_vm1, %v4578_v24 }
 0x2cf   : > { %3627 = vmatpush3.bf16.msra.mxu1 %v4586_v46  ;;  %3628 = vmatprep.mubr.msk.bf16.mxu1 %vm4274_vm0, %v4273_v5 }
 0x2d0   : > { %3632 = vmatprep.subr.bf16.mxu1 %v4273_v5 }
 0x3a1   : > { %v916_v48 = vpop.f32.mrb[4].mxu1 }
 0x3a2   : > { %v3624_v49 = vpop.f32.mrb[5].mxu1  ;;  %v922_v50 = vsel %vm875_vm1, %v916_v48, -inf }
 0x3a3   : > { %923 = vmax.xlane.f32.xlu0 %v922_v50  ;;  %v919_v51 = vpop.f32.mrb[6].mxu1 }
 0x3a4   : > { %v3625_v52 = vpop.f32.mrb[7].mxu1 }
 0x3b9   : > { %982 = vrot.lane.b32.xlu0 %v4584_v45, %s4275_s29 }
 0x430   : > { %v924_v53 = vpop.xlane.xlu0 %923 }
 0x431   : > { %v925_v54 = vsub.f32 %v916_v48, %v924_v53 }
 0x433   : > { %v926_v55 = vmul.f32 1.442695, %v925_v54 }
 0x434   : > { %v983_v61 = vpop.permute.xlu0 %982 }
 0x435   : > { %3995 = vpow2.f32 %v926_v55  ;;  %v988_v63 = vsel %vm875_vm1, %v983_v61, 0 }
 0x43f   : > { %v3996_v56 = vpop.eup %3995 }
 0x440   : > { %v928_v57 = vsel %vm875_vm1, %v3996_v56, 0.0 }
 0x441   : > { %929 = vadd.xlane.f32.xlu1 %v928_v57 }
 0x452   : > { %979 = vrot.lane.b32.xlu1 %v4578_v24, %s4275_s29 }
 0x4ce   : > { %v930_v58 = vpop.xlane.xlu1 %929 }
 0x4cf   : > { %3997 = vrcp.f32 %v930_v58 }
 0x4d2   : > { %v980_v0 = vpop.permute.xlu1 %979 }
 0x4d9   : > { %v3998_v59 = vpop.eup %3997 }
 0x4da   : > { %v932_v60 = vmul.f32 %v3998_v59, %v3996_v56 }
 0x4dc   : > { %v933_v62 = vpack.c.bf16 %v932_v60, %v932_v60 }
 0x4de   : > { %3629 = vmatmul.mubr.msk.bf16.vlgmr.msra.gmra.mrb[8].mxu1 %vm875_vm1, %v933_v62  ;;  %v1784_v62 = vsel %vm875_vm1, %v4580_v43, 0 }
 0x4df   : > { %3633 = vmatpush3.bf16.xpose.msra.mxu1 %v988_v63  ;;  %3634 = vmatprep.mubr.msk.bf16.mxu1 %vm4274_vm0, %v4273_v5 }
 0x4e0   : > { %3638 = vmatprep.subr.bf16.mxu1 %v4273_v5 }
 0x4e6   : > { %3635 = vmatmul.mubr.msk.bf16.vlgmr.msra.gmra.mrb[12].mxu1 %vm875_vm1, %v980_v0 }
 0x4e7   : > { %3640 = vmatprep.mubr.msk.bf16.mxu1 %vm4274_vm0, %v4273_v5 }
 0x5b1   : > { %v971_v1 = vpop.f32.mrb[8].mxu1 }
 0x5b2   : > { %977 = vst.msk [vmem:[#allocation2] sm:$0xff] %vm875_vm1, %v971_v1  ;;  %v3630_v2 = vpop.f32.mrb[9].mxu1 }
 0x5b3   : > { %v974_v3 = vpop.f32.mrb[10].mxu1 }
 0x5b4   : > { %v3631_v4 = vpop.f32.mrb[11].mxu1 }
 0x5b9   : > { %v1024_v6 = vpop.f32.mrb[12].mxu1 }
 0x5ba   : > { %v3636_v7 = vpop.f32.mrb[13].mxu1  ;;  %v1030_v8 = vsel %vm875_vm1, %v1024_v6, -inf }
 0x5bb   : > { %1031 = vmax.xlane.f32.xlu1 %v1030_v8  ;;  %v1027_v9 = vpop.f32.mrb[14].mxu1 }
 0x5bc   : > { %v3637_v10 = vpop.f32.mrb[15].mxu1 }
 0x5cc   : > { %1097 = vrot.lane.b32.xlu1 %v4584_v45, %s4276_s11 }
 0x5d0   : > { %1095 = vrot.lane.b32.xlu1 %v4578_v24, %s4276_s11 }
 0x648   : > { %v1032_v11 = vpop.xlane.xlu1 %1031 }
 0x649   : > { %v1033_v12 = vsub.f32 %v1024_v6, %v1032_v11 }
 0x64b   : > { %v1034_v13 = vmul.f32 1.442695, %v1033_v12 }
 0x64c   : > { %v1098_v20 = vpop.permute.xlu1 %1097 }
 0x64d   : > { %3999 = vpow2.f32 %v1034_v13  ;;  %v1103_v22 = vsel %vm875_vm1, %v1098_v20, 0 }
 0x650   : > { %v1096_v23 = vpop.permute.xlu1 %1095 }
 0x657   : > { %v4000_v14 = vpop.eup %3999 }
 0x658   : > { %v1036_v15 = vsel %vm875_vm1, %v4000_v14, 0.0 }
 0x659   : > { %1037 = vadd.xlane.f32.xlu0 %v1036_v15 }
 0x66f   : > { %1043 = vrot.lane.b32.xlu0 %v4586_v46, %s4275_s29 }
 0x6e6   : > { %v1038_v16 = vpop.xlane.xlu0 %1037 }
 0x6e7   : > { %4001 = vrcp.f32 %v1038_v16 }
 0x6ea   : > { %v1044_v17 = vpop.permute.xlu0 %1043 }
 0x6eb   : > { %3639 = vmatpush3.bf16.msra.mxu1 %v1044_v17 }
 0x6ec   : > { %3644 = vmatprep.subr.bf16.mxu1 %v4273_v5 }
 0x6f1   : > { %v4002_v18 = vpop.eup %4001 }
 0x6f2   : > { %v1040_v19 = vmul.f32 %v4002_v18, %v4000_v14 }
 0x6f4   : > { %v1041_v21 = vpack.c.bf16 %v1040_v19, %v1040_v19 }
 0x6f6   : > { %3641 = vmatmul.mubr.msk.bf16.vlgmr.msra.gmra.mrb[16].mxu1 %vm875_vm1, %v1041_v21 }
 0x6f7   : > { %3645 = vmatpush3.bf16.xpose.msra.mxu1 %v1103_v22  ;;  %3646 = vmatprep.mubr.msk.bf16.mxu1 %vm4274_vm0, %v4273_v5 }
 0x6f8   : > { %3650 = vmatprep.subr.bf16.mxu1 %v4273_v5 }
 0x6fe   : > { %3647 = vmatmul.mubr.msk.bf16.vlgmr.msra.gmra.mrb[20].mxu1 %vm875_vm1, %v1096_v23 }
 0x6ff   : > { %3652 = vmatprep.mubr.msk.bf16.mxu1 %vm4274_vm0, %v4273_v5 }
 0x7c9   : > { %v4629_v25 = vpop.f32.mrb[16].mxu1 }
 0x7ca   : > { %v3642_v26 = vpop.f32.mrb[17].mxu1 }
 0x7cb   : > { %v1086_v27 = vpop.f32.mrb[18].mxu1 }
 0x7cc   : > { %v3643_v28 = vpop.f32.mrb[19].mxu1 }
 0x7d1   : > { %v1139_v29 = vpop.f32.mrb[20].mxu1 }
 0x7d2   : > { %v3648_v30 = vpop.f32.mrb[21].mxu1  ;;  %v1145_v31 = vsel %vm875_vm1, %v1139_v29, -inf }
 0x7d3   : > { %1146 = vmax.xlane.f32.xlu1 %v1145_v31  ;;  %v1142_v32 = vpop.f32.mrb[22].mxu1 }
 0x7d4   : > { %v3649_v33 = vpop.f32.mrb[23].mxu1 }
 0x7e4   : > { %1211 = vrot.lane.b32.xlu1 %v4584_v45, %s4277_s12 }
 0x7e8   : > { %1209 = vrot.lane.b32.xlu1 %v4578_v24, %s4277_s12 }
 0x7ec   : > { %1323 = vrot.lane.b32.xlu1 %v4578_v24, %s4278_s16 }
 0x7f0   : > { %1437 = vrot.lane.b32.xlu1 %v4578_v24, %s4279_s22 }
 0x7f4   : > { %1551 = vrot.lane.b32.xlu1 %v4578_v24, %s4280_s18 }
 0x7f8   : > { %1665 = vrot.lane.b32.xlu1 %v4578_v24, %s4281_s21 }
 0x7fc   : > { %1882 = vrot.lane.b32.xlu1 %v4645_v34, %s4275_s29 }
 0x800   : > { %1997 = vrot.lane.b32.xlu1 %v4645_v34, %s4276_s11 }
 0x804   : > { %2110 = vrot.lane.b32.xlu1 %v4645_v34, %s4277_s12 }
 0x808   : > { %2223 = vrot.lane.b32.xlu1 %v4645_v34, %s4278_s16 }
 0x80c   : > { %2336 = vrot.lane.b32.xlu1 %v4645_v34, %s4279_s22 }
 0x810   : > { %2449 = vrot.lane.b32.xlu1 %v4645_v34, %s4280_s18 }
 0x814   : > { %2562 = vrot.lane.b32.xlu1 %v4645_v34, %s4281_s21 }
 0x860   : > { %v1147_v24 = vpop.xlane.xlu1 %1146 }
 0x861   : > { %v1148_v35 = vsub.f32 %v1139_v29, %v1147_v24 }
 0x863   : > { %v1149_v36 = vmul.f32 1.442695, %v1148_v35 }
 0x864   : > { %v1212_v40 = vpop.permute.xlu1 %1211 }
 0x865   : > { %4003 = vpow2.f32 %v1149_v36  ;;  %v1217_v52 = vsel %vm875_vm1, %v1212_v40, 0 }
 0x868   : > { %v1210_v47 = vpop.permute.xlu1 %1209 }
 0x86c   : > { %v1324_v53 = vpop.permute.xlu1 %1323 }
 0x86f   : > { %v4004_v37 = vpop.eup %4003 }
 0x870   : > { %v1151_v38 = vsel %vm875_vm1, %v4004_v37, 0.0  ;;  %v1438_v56 = vpop.permute.xlu1 %1437 }
 0x871   : > { %1152 = vadd.xlane.f32.xlu0 %v1151_v38 }
 0x874   : > { %v1552_v59 = vpop.permute.xlu1 %1551 }
 0x878   : > { %v1666_v61 = vpop.permute.xlu1 %1665 }
 0x887   : > { %1157 = vrot.lane.b32.xlu0 %v4586_v46, %s4276_s11 }
 0x88b   : > { %1325 = vrot.lane.b32.xlu0 %v4584_v45, %s4278_s16 }
 0x88f   : > { %1439 = vrot.lane.b32.xlu0 %v4584_v45, %s4279_s22 }
 0x893   : > { %1553 = vrot.lane.b32.xlu0 %v4584_v45, %s4280_s18 }
 0x897   : > { %1667 = vrot.lane.b32.xlu0 %v4584_v45, %s4281_s21 }
 0x89b   : > { %1885 = vrot.lane.b32.xlu0 %v4580_v43, %s4275_s29 }
 0x89f   : > { %1999 = vrot.lane.b32.xlu0 %v4580_v43, %s4276_s11 }
 0x8a3   : > { %2112 = vrot.lane.b32.xlu0 %v4580_v43, %s4277_s12 }
 0x8a7   : > { %2225 = vrot.lane.b32.xlu0 %v4580_v43, %s4278_s16 }
 0x8ab   : > { %2338 = vrot.lane.b32.xlu0 %v4580_v43, %s4279_s22 }
 0x8af   : > { %2451 = vrot.lane.b32.xlu0 %v4580_v43, %s4280_s18 }
 0x8b3   : > { %2564 = vrot.lane.b32.xlu0 %v4580_v43, %s4281_s21  ;;  %v1883_v43 = vpop.permute.xlu1 %1882 }
 0x8b7   : > { %v1998_v4 = vpop.permute.xlu1 %1997 }
 0x8bb   : > { %v2111_v8 = vpop.permute.xlu1 %2110 }
 0x8bf   : > { %v2224_v11 = vpop.permute.xlu1 %2223 }
 0x8c3   : > { %v2337_v14 = vpop.permute.xlu1 %2336 }
 0x8c7   : > { %v2450_v17 = vpop.permute.xlu1 %2449 }
 0x8cb   : > { %v2563_v19 = vpop.permute.xlu1 %2562 }
 0x8fe   : > { %v1153_v39 = vpop.xlane.xlu0 %1152 }
 0x8ff   : > { %4005 = vrcp.f32 %v1153_v39 }
 0x902   : > { %v1158_v41 = vpop.permute.xlu0 %1157 }
 0x903   : > { %3651 = vmatpush3.bf16.msra.mxu1 %v1158_v41 }
 0x904   : > { %3656 = vmatprep.subr.bf16.mxu1 %v4273_v5 }
 0x906   : > { %v1326_v42 = vpop.permute.xlu0 %1325 }
 0x907   : > { %v1331_v45 = vsel %vm875_vm1, %v1326_v42, 0 }
 0x908   : > { %3669 = vmatpush3.bf16.xpose.msra.mxu0 %v1331_v45 }
 0x909   : > { %v4006_v48 = vpop.eup %4005  ;;  %3680 = vmatprep.subr.bf16.mxu0 %v4273_v5 }
 0x90a   : > { %v1155_v49 = vmul.f32 %v4006_v48, %v4004_v37  ;;  %v1440_v50 = vpop.permute.xlu0 %1439 }
 0x90b   : > { %v1445_v54 = vsel %vm875_vm1, %v1440_v50, 0 }
 0x90c   : > { %v1156_v51 = vpack.c.bf16 %v1155_v49, %v1155_v49 }
 0x90e   : > { %3653 = vmatmul.mubr.msk.bf16.vlgmr.msra.gmra.mrb[24].mxu1 %vm875_vm1, %v1156_v51  ;;  %v1554_v55 = vpop.permute.xlu0 %1553 }
 0x90f   : > { %3657 = vmatpush3.bf16.xpose.msra.mxu1 %v1217_v52  ;;  %3671 = vmatmul.mubr.msk.bf16.vlgmr.msra.gmra.mrb[8].mxu0 %vm875_vm1, %v1324_v53  ;;  %v1559_v57 = vsel %vm875_vm1, %v1554_v55, 0 }
 0x910   : > { %3681 = vmatpush3.bf16.xpose.msra.mxu0 %v1445_v54  ;;  %3658 = vmatprep.mubr.msk.bf16.mxu1 %vm4274_vm0, %v4273_v5 }
 0x911   : > { %3682 = vmatprep.mubr.msk.bf16.mxu0 %vm4274_vm0, %v4273_v5  ;;  %3692 = vmatprep.subr.bf16.mxu0 %v4273_v5 }
 0x912   : > { %3662 = vmatprep.subr.bf16.mxu1 %v4273_v5  ;;  %v1668_v58 = vpop.permute.xlu0 %1667 }
 0x913   : > { %v1673_v60 = vsel %vm875_vm1, %v1668_v58, 0 }
 0x916   : > { %3659 = vmatmul.mubr.msk.bf16.vlgmr.msra.gmra.mrb[28].mxu1 %vm875_vm1, %v1210_v47  ;;  %v1886_v63 = vpop.permute.xlu0 %1885 }
 0x917   : > { %3683 = vmatmul.mubr.msk.bf16.vlgmr.msra.gmra.mrb[12].mxu0 %vm875_vm1, %v1438_v56  ;;  %3664 = vmatprep.mubr.msk.bf16.mxu1 %vm4274_vm0, %v4273_v5  ;;  %v1891_v0 = vsel %vm875_vm1, %v1886_v63, 0 }
 0x918   : > { %3693 = vmatpush3.bf16.xpose.msra.mxu0 %v1559_v57  ;;  %3694 = vmatprep.mubr.msk.bf16.mxu0 %vm4274_vm0, %v4273_v5 }
 0x919   : > { %3704 = vmatprep.subr.bf16.mxu0 %v4273_v5 }
 0x91a   : > { %v2000_v1 = vpop.permute.xlu0 %1999 }
 0x91b   : > { %v2005_v2 = vsel %vm875_vm1, %v2000_v1, 0 }
 0x91e   : > { %v2113_v3 = vpop.permute.xlu0 %2112 }
 0x91f   : > { %3695 = vmatmul.mubr.msk.bf16.vlgmr.msra.gmra.mrb[16].mxu0 %vm875_vm1, %v1552_v59  ;;  %v2118_v6 = vsel %vm875_vm1, %v2113_v3, 0 }
 0x920   : > { %3705 = vmatpush3.bf16.xpose.msra.mxu0 %v1673_v60  ;;  %3706 = vmatprep.mubr.msk.bf16.mxu0 %vm4274_vm0, %v4273_v5 }
 0x921   : > { %3716 = vmatprep.subr.bf16.mxu0 %v4273_v5 }
 0x922   : > { %v2226_v7 = vpop.permute.xlu0 %2225 }
 0x923   : > { %v2231_v9 = vsel %vm875_vm1, %v2226_v7, 0 }
 0x926   : > { %v2339_v10 = vpop.permute.xlu0 %2338 }
 0x927   : > { %3707 = vmatmul.mubr.msk.bf16.vlgmr.msra.gmra.mrb[20].mxu0 %vm875_vm1, %v1666_v61  ;;  %v2344_v12 = vsel %vm875_vm1, %v2339_v10, 0 }
 0x928   : > { %3717 = vmatpush3.bf16.xpose.msra.mxu0 %v1784_v62  ;;  %3718 = vmatprep.mubr.msk.bf16.mxu0 %vm4274_vm0, %v4273_v5 }
 0x929   : > { %3728 = vmatprep.subr.bf16.mxu0 %v4273_v5 }
 0x92a   : > { %v2452_v13 = vpop.permute.xlu0 %2451 }
 0x92b   : > { %v2457_v15 = vsel %vm875_vm1, %v2452_v13, 0 }
 0x92e   : > { %v2565_v16 = vpop.permute.xlu0 %2564 }
 0x92f   : > { %3719 = vmatmul.mubr.msk.bf16.vlgmr.msra.gmra.mrb[24].mxu0 %vm875_vm1, %v4645_v34  ;;  %v2570_v18 = vsel %vm875_vm1, %v2565_v16, 0 }
 0x930   : > { %3729 = vmatpush3.bf16.xpose.msra.mxu0 %v1891_v0  ;;  %3730 = vmatprep.mubr.msk.bf16.mxu0 %vm4274_vm0, %v4273_v5 }
 0x931   : > { %3740 = vmatprep.subr.bf16.mxu0 %v4273_v5 }
 0x937   : > { %3731 = vmatmul.mubr.msk.bf16.vlgmr.msra.gmra.mrb[28].mxu0 %vm875_vm1, %v1883_v43 }
 0x938   : > { %3741 = vmatpush3.bf16.xpose.msra.mxu0 %v2005_v2  ;;  %3742 = vmatprep.mubr.msk.bf16.mxu0 %vm4274_vm0, %v4273_v5 }
 0x939   : > { %3752 = vmatprep.subr.bf16.mxu0 %v4273_v5 }
 0x93f   : > { %3743 = vmatmul.mubr.msk.bf16.vlgmr.msra.gmra.mrb[32].mxu0 %vm875_vm1, %v1998_v4 }
 0x940   : > { %3753 = vmatpush3.bf16.xpose.msra.mxu0 %v2118_v6  ;;  %3754 = vmatprep.mubr.msk.bf16.mxu0 %vm4274_vm0, %v4273_v5 }
 0x941   : > { %3764 = vmatprep.subr.bf16.mxu0 %v4273_v5 }
 0x947   : > { %3755 = vmatmul.mubr.msk.bf16.vlgmr.msra.gmra.mrb[36].mxu0 %vm875_vm1, %v2111_v8 }
 0x948   : > { %3765 = vmatpush3.bf16.xpose.msra.mxu0 %v2231_v9  ;;  %3766 = vmatprep.mubr.msk.bf16.mxu0 %vm4274_vm0, %v4273_v5 }
 0x949   : > { %3776 = vmatprep.subr.bf16.mxu0 %v4273_v5 }
 0x94f   : > { %3767 = vmatmul.mubr.msk.bf16.vlgmr.msra.gmra.mrb[40].mxu0 %vm875_vm1, %v2224_v11 }
 0x950   : > { %3777 = vmatpush3.bf16.xpose.msra.mxu0 %v2344_v12  ;;  %3778 = vmatprep.mubr.msk.bf16.mxu0 %vm4274_vm0, %v4273_v5 }
 0x951   : > { %3788 = vmatprep.subr.bf16.mxu0 %v4273_v5 }
 0x957   : > { %3779 = vmatmul.mubr.msk.bf16.vlgmr.msra.gmra.mrb[44].mxu0 %vm875_vm1, %v2337_v14 }
 0x958   : > { %3789 = vmatpush3.bf16.xpose.msra.mxu0 %v2457_v15  ;;  %3790 = vmatprep.mubr.msk.bf16.mxu0 %vm4274_vm0, %v4273_v5 }
 0x959   : > { %3800 = vmatprep.subr.bf16.mxu0 %v4273_v5 }
 0x95f   : > { %3791 = vmatmul.mubr.msk.bf16.vlgmr.msra.gmra.mrb[48].mxu0 %vm875_vm1, %v2450_v17 }
 0x960   : > { %3801 = vmatpush3.bf16.xpose.msra.mxu0 %v2570_v18  ;;  %3802 = vmatprep.mubr.msk.bf16.mxu0 %vm4274_vm0, %v4273_v5 }
 0x961   : > { %3812 = vmatprep.subr.bf16.mxu0 %v4273_v5 }
 0x967   : > { %3803 = vmatmul.mubr.msk.bf16.vlgmr.msra.gmra.mrb[52].mxu0 %vm875_vm1, %v2563_v19 }
 0x968   : > { %3828 = vmatprep.mubr.msk.bf16.mxu0 %vm4274_vm0, %v4273_v5 }
 0x9e1   : > { %v4757_v20 = vpop.f32.mrb[24].mxu1 }
 0x9e2   : > { %v3654_v21 = vpop.f32.mrb[25].mxu1  ;;  %v4759_v22 = vpop.f32.mrb[8].mxu0 }
 0x9e3   : > { %v1200_v23 = vpop.f32.mrb[26].mxu1  ;;  %v3672_v26 = vpop.f32.mrb[9].mxu0  ;;  %v1373_v27 = vsel %vm875_vm1, %v4759_v22, -inf }
 0x9e4   : > { %1374 = vmax.xlane.f32.xlu1 %v1373_v27  ;;  %v3655_v28 = vpop.f32.mrb[27].mxu1  ;;  %v1370_v29 = vpop.f32.mrb[10].mxu0 }
 0x9e5   : > { %v3673_v30 = vpop.f32.mrb[11].mxu0 }
 0x9e9   : > { %v4763_v31 = vpop.f32.mrb[28].mxu1 }
 0x9ea   : > { %v3660_v32 = vpop.f32.mrb[29].mxu1  ;;  %v4765_v33 = vpop.f32.mrb[12].mxu0  ;;  %v1259_v34 = vsel %vm875_vm1, %v4763_v31, -inf }
 0x9eb   : > { %v3684_v24 = vpop.f32.mrb[13].mxu0  ;;  %1260 = vmax.xlane.f32.xlu0 %v1259_v34  ;;  %v1256_v35 = vpop.f32.mrb[30].mxu1  ;;  %v1487_v39 = vsel %vm875_vm1, %v4765_v33, -inf }
 0x9ec   : > { %v3661_v36 = vpop.f32.mrb[31].mxu1  ;;  %v1484_v37 = vpop.f32.mrb[14].mxu0 }
 0x9ed   : > { %v3685_v38 = vpop.f32.mrb[15].mxu0 }
 0x9ef   : > { %1488 = vmax.xlane.f32.xlu0 %v1487_v39 }
 0x9f2   : > { %v4771_v40 = vpop.f32.mrb[16].mxu0 }
 0x9f3   : > { %v3696_v41 = vpop.f32.mrb[17].mxu0  ;;  %v1601_v42 = vsel %vm875_vm1, %v4771_v40, -inf }
 0x9f4   : > { %v1598_v45 = vpop.f32.mrb[18].mxu0  ;;  %1602 = vmax.xlane.f32.xlu0 %v1601_v42 }
 0x9f5   : > { %v3697_v47 = vpop.f32.mrb[19].mxu0 }
 0x9fa   : > { %v4775_v48 = vpop.f32.mrb[20].mxu0 }
 0x9fb   : > { %v3708_v49 = vpop.f32.mrb[21].mxu0  ;;  %v1715_v50 = vsel %vm875_vm1, %v4775_v48, -inf }
 0x9fc   : > { %v1712_v51 = vpop.f32.mrb[22].mxu0  ;;  %1716 = vmax.xlane.f32.xlu0 %v1715_v50 }
 0x9fd   : > { %v3709_v52 = vpop.f32.mrb[23].mxu0 }
 0xa02   : > { %v4779_v53 = vpop.f32.mrb[24].mxu0 }
 0xa03   : > { %v3720_v54 = vpop.f32.mrb[25].mxu0  ;;  %v1826_v55 = vsel %vm875_vm1, %v4779_v53, -inf }
 0xa04   : > { %1827 = vmax.xlane.f32.xlu1 %v1826_v55  ;;  %v1823_v56 = vpop.f32.mrb[26].mxu0 }
 0xa05   : > { %v3721_v57 = vpop.f32.mrb[27].mxu0 }
 0xa0a   : > { %v4783_v58 = vpop.f32.mrb[28].mxu0 }
 0xa0b   : > { %v3732_v59 = vpop.f32.mrb[29].mxu0  ;;  %v1933_v60 = vsel %vm875_vm1, %v4783_v58, -inf }
 0xa0c   : > { %v1930_v61 = vpop.f32.mrb[30].mxu0  ;;  %1934 = vmax.xlane.f32.xlu0 %v1933_v60 }
 0xa0d   : > { %v3733_v62 = vpop.f32.mrb[31].mxu0 }
 0xa12   : > { %v4787_v63 = vpop.f32.mrb[32].mxu0 }
 0xa13   : > { %v3744_v0 = vpop.f32.mrb[33].mxu0  ;;  %v2047_v1 = vsel %vm875_vm1, %v4787_v63, -inf }
 0xa14   : > { %2048 = vmax.xlane.f32.xlu1 %v2047_v1  ;;  %v2044_v43 = vpop.f32.mrb[34].mxu0 }
 0xa15   : > { %v3745_v2 = vpop.f32.mrb[35].mxu0 }
 0xa1a   : > { %v4791_v3 = vpop.f32.mrb[36].mxu0 }
 0xa1b   : > { %v3756_v4 = vpop.f32.mrb[37].mxu0  ;;  %v2160_v6 = vsel %vm875_vm1, %v4791_v3, -inf }
 0xa1c   : > { %v2157_v7 = vpop.f32.mrb[38].mxu0  ;;  %2161 = vmax.xlane.f32.xlu0 %v2160_v6 }
 0xa1d   : > { %v3757_v8 = vpop.f32.mrb[39].mxu0 }
 0xa22   : > { %v4795_v9 = vpop.f32.mrb[40].mxu0 }
 0xa23   : > { %v3768_v10 = vpop.f32.mrb[41].mxu0  ;;  %v2273_v11 = vsel %vm875_vm1, %v4795_v9, -inf }
 0xa24   : > { %2274 = vmax.xlane.f32.xlu1 %v2273_v11  ;;  %v2270_v12 = vpop.f32.mrb[42].mxu0 }
 0xa25   : > { %v3769_v13 = vpop.f32.mrb[43].mxu0 }
 0xa2a   : > { %v4799_v14 = vpop.f32.mrb[44].mxu0 }
 0xa2b   : > { %v3780_v15 = vpop.f32.mrb[45].mxu0  ;;  %v2386_v16 = vsel %vm875_vm1, %v4799_v14, -inf }
 0xa2c   : > { %v2383_v17 = vpop.f32.mrb[46].mxu0  ;;  %2387 = vmax.xlane.f32.xlu0 %v2386_v16 }
 0xa2d   : > { %v3781_v18 = vpop.f32.mrb[47].mxu0 }
 0xa32   : > { %v4803_v19 = vpop.f32.mrb[48].mxu0 }
 0xa33   : > { %v3792_v21 = vpop.f32.mrb[49].mxu0  ;;  %v2499_v23 = vsel %vm875_vm1, %v4803_v19, -inf }
 0xa34   : > { %v2496_v26 = vpop.f32.mrb[50].mxu0  ;;  %2500 = vmax.xlane.f32.xlu0 %v2499_v23 }
 0xa35   : > { %v3793_v27 = vpop.f32.mrb[51].mxu0 }
 0xa3a   : > { %v4807_v28 = vpop.f32.mrb[52].mxu0 }
 0xa3b   : > { %v3804_v29 = vpop.f32.mrb[53].mxu0  ;;  %v2612_v30 = vsel %vm875_vm1, %v4807_v28, -inf }
 0xa3c   : > { %v2609_v32 = vpop.f32.mrb[54].mxu0  ;;  %2613 = vmax.xlane.f32.xlu0 %v2612_v30 }
 0xa3d   : > { %v3805_v34 = vpop.f32.mrb[55].mxu0 }
 0xa71   : > { %v1375_v24 = vpop.xlane.xlu1 %1374 }
 0xa72   : > { %v1376_v35 = vsub.f32 %v4759_v22, %v1375_v24 }
 0xa74   : > { %v1377_v36 = vmul.f32 1.442695, %v1376_v35 }
 0xa76   : > { %4007 = vpow2.f32 %v1377_v36 }
 0xa78   : > { %v1261_v37 = vpop.xlane.xlu0 %1260 }
 0xa79   : > { %v1262_v60 = vsub.f32 %v4763_v31, %v1261_v37 }
 0xa7b   : > { %v1263_v62 = vmul.f32 1.442695, %v1262_v60 }
 0xa7c   : > { %v1489_v38 = vpop.xlane.xlu0 %1488 }
 0xa7d   : > { %v1490_v39 = vsub.f32 %v4765_v33, %v1489_v38 }
 0xa7f   : > { %v1491_v41 = vmul.f32 1.442695, %v1490_v39 }
 0xa80   : > { %v4813_v42 = vpop.eup %4007 }
 0xa81   : > { %4009 = vpow2.f32 %v1491_v41  ;;  %v1603_v45 = vpop.xlane.xlu0 %1602  ;;  %v1379_v47 = vsel %vm875_vm1, %v4813_v42, 0.0 }
 0xa82   : > { %v1604_v49 = vsub.f32 %v4771_v40, %v1603_v45  ;;  %1380 = vadd.xlane.f32.xlu1 %v1379_v47 }
 0xa84   : > { %v1605_v50 = vmul.f32 1.442695, %v1604_v49 }
 0xa86   : > { %4011 = vpow2.f32 %v1605_v50 }
 0xa89   : > { %v1717_v22 = vpop.xlane.xlu0 %1716 }
 0xa8a   : > { %v1718_v51 = vsub.f32 %v4775_v48, %v1717_v22 }
 0xa8b   : > { %v4819_v52 = vpop.eup %4009 }
 0xa8c   : > { %v1719_v54 = vmul.f32 1.442695, %v1718_v51  ;;  %v1493_v33 = vsel %vm875_vm1, %v4819_v52, 0.0 }
 0xa8d   : > { %1494 = vadd.xlane.f32.xlu1 %v1493_v33 }
 0xa8e   : > { %4013 = vpow2.f32 %v1719_v54 }
 0xa90   : > { %v4823_v55 = vpop.eup %4011 }
 0xa91   : > { %v1607_v56 = vsel %vm875_vm1, %v4823_v55, 0.0  ;;  %v1828_v48 = vpop.xlane.xlu1 %1827 }
 0xa92   : > { %1608 = vadd.xlane.f32.xlu0 %v1607_v56  ;;  %v1829_v59 = vsub.f32 %v4779_v53, %v1828_v48 }
 0xa94   : > { %v1830_v61 = vmul.f32 1.442695, %v1829_v59 }
 0xa96   : > { %4015 = vpow2.f32 %v1830_v61 }
 0xa97   : > { %4017 = vpow2.f32 %v1263_v62 }
 0xa98   : > { %v4827_v40 = vpop.eup %4013 }
 0xa99   : > { %v1721_v57 = vsel %vm875_vm1, %v4827_v40, 0.0  ;;  %v1935_v0 = vpop.xlane.xlu0 %1934 }
 0xa9a   : > { %1722 = vadd.xlane.f32.xlu0 %v1721_v57  ;;  %v1936_v1 = vsub.f32 %v4783_v58, %v1935_v0 }
 0xa9c   : > { %v1937_v4 = vmul.f32 1.442695, %v1936_v1 }
 0xa9e   : > { %1271 = vrot.lane.b32.xlu1 %v4586_v46, %s4277_s12  ;;  %4019 = vpow2.f32 %v1937_v4 }
 0xaa0   : > { %v4840_v43 = vpop.eup %4015 }
 0xaa1   : > { %v2049_v2 = vpop.xlane.xlu1 %2048  ;;  %v1832_v31 = vsel %vm875_vm1, %v4840_v43, 0.0  ;;  %v4845_v6 = vpop.eup %4017 }
 0xaa2   : > { %v2050_v53 = vsub.f32 %v4787_v63, %v2049_v2  ;;  %v1265_v8 = vsel %vm875_vm1, %v4845_v6, 0.0 }
 0xaa4   : > { %v2051_v7 = vmul.f32 1.442695, %v2050_v53 }
 0xaa6   : > { %4021 = vpow2.f32 %v2051_v7 }
 0xaa8   : > { %v4849_v58 = vpop.eup %4019 }
 0xaa9   : > { %v1939_v10 = vsel %vm875_vm1, %v4849_v58, 0.0  ;;  %v2162_v12 = vpop.xlane.xlu0 %2161 }
 0xaaa   : > { %v2163_v13 = vsub.f32 %v4791_v3, %v2162_v12 }
 0xaac   : > { %v2164_v15 = vmul.f32 1.442695, %v2163_v13 }
 0xaae   : > { %4023 = vpow2.f32 %v2164_v15 }
 0xab0   : > { %1385 = vrot.lane.b32.xlu0 %v4586_v46, %s4278_s16  ;;  %v4853_v11 = vpop.eup %4021 }
 0xab1   : > { %v2053_v63 = vsel %vm875_vm1, %v4853_v11, 0.0  ;;  %v2275_v16 = vpop.xlane.xlu1 %2274 }
 0xab2   : > { %v2276_v17 = vsub.f32 %v4795_v9, %v2275_v16 }
 0xab4   : > { %1499 = vrot.lane.b32.xlu0 %v4586_v46, %s4279_s22  ;;  %v2277_v23 = vmul.f32 1.442695, %v2276_v17 }
 0xab6   : > { %4025 = vpow2.f32 %v2277_v23 }
 0xab8   : > { %v4863_v18 = vpop.eup %4023 }
 0xab9   : > { %v2388_v21 = vpop.xlane.xlu0 %2387  ;;  %v2166_v27 = vsel %vm875_vm1, %v4863_v18, 0.0 }
 0xaba   : > { %v2389_v26 = vsub.f32 %v4799_v14, %v2388_v21 }
 0xabc   : > { %v2390_v3 = vmul.f32 1.442695, %v2389_v26 }
 0xabe   : > { %4027 = vpow2.f32 %v2390_v3 }
 0xac0   : > { %v4870_v24 = vpop.eup %4025 }
 0xac1   : > { %v2501_v29 = vpop.xlane.xlu0 %2500  ;;  %v2279_v14 = vsel %vm875_vm1, %v4870_v24, 0.0 }
 0xac2   : > { %1833 = vadd.xlane.f32.xlu1 %v1832_v31  ;;  %v2502_v30 = vsub.f32 %v4803_v19, %v2501_v29 }
 0xac6   : > { %1266 = vadd.xlane.f32.xlu1 %v1265_v8 }
 0xac8   : > { %v4874_v35 = vpop.eup %4027 }
 0xac9   : > { %v2614_v32 = vpop.xlane.xlu0 %2613  ;;  %v2392_v19 = vsel %vm875_vm1, %v4874_v35, 0.0 }
 0xaca   : > { %v2615_v9 = vsub.f32 %v4807_v28, %v2614_v32 }
 0xacc   : > { %v2616_v34 = vmul.f32 1.442695, %v2615_v9 }
 0xad3   : > { %1940 = vadd.xlane.f32.xlu0 %v1939_v10 }
 0xad7   : > { %1613 = vrot.lane.b32.xlu1 %v4586_v46, %s4280_s18  ;;  %2054 = vadd.xlane.f32.xlu0 %v2053_v63 }
 0xaed   : > { %1727 = vrot.lane.b32.xlu0 %v4586_v46, %s4281_s21  ;;  %v2503_v46 = vmul.f32 1.442695, %v2502_v30 }
 0xaef   : > { %4029 = vpow2.f32 %v2503_v46 }
 0xaf0   : > { %4031 = vpow2.f32 %v2616_v34 }
 0xaf9   : > { %v4880_v36 = vpop.eup %4029 }
 0xafa   : > { %v2505_v28 = vsel %vm875_vm1, %v4880_v36, 0.0  ;;  %v4886_v37 = vpop.eup %4031 }
 0xafb   : > { %2167 = vadd.xlane.f32.xlu1 %v2166_v27  ;;  %v2618_v39 = vsel %vm875_vm1, %v4886_v37, 0.0 }
 0xb0c   : > { %2280 = vadd.xlane.f32.xlu0 %v2279_v14  ;;  %1946 = vrot.lane.b32.xlu1 %v4582_v44, %s4275_s29 }
 0xb0f   : > { %v1381_v38 = vpop.xlane.xlu1 %1380 }
 0xb10   : > { %2059 = vrot.lane.b32.xlu1 %v4582_v44, %s4276_s11  ;;  %2393 = vadd.xlane.f32.xlu0 %v2392_v19 }
 0xb14   : > { %2172 = vrot.lane.b32.xlu1 %v4582_v44, %s4277_s12  ;;  %2506 = vadd.xlane.f32.xlu0 %v2505_v28 }
 0xb18   : > { %2285 = vrot.lane.b32.xlu1 %v4582_v44, %s4278_s16  ;;  %2619 = vadd.xlane.f32.xlu0 %v2618_v39 }
 0xb1a   : > { %v1495_v41 = vpop.xlane.xlu1 %1494 }
 0xb1c   : > { %2511 = vrot.lane.b32.xlu1 %v4582_v44, %s4280_s18 }
 0xb1e   : > { %v1272_v45 = vpop.permute.xlu1 %1271 }
 0xb1f   : > { %3663 = vmatpush3.bf16.msra.mxu1 %v1272_v45  ;;  %v1609_v50 = vpop.xlane.xlu0 %1608 }
 0xb20   : > { %2624 = vrot.lane.b32.xlu1 %v4582_v44, %s4281_s21  ;;  %3674 = vmatprep.subr.bf16.mxu1 %v4273_v5 }
 0xb24   : > { %1090 = vrot.lane.b32.xlu1 %v4629_v25, %s4281_s21 }
 0xb27   : > { %v1723_v22 = vpop.xlane.xlu0 %1722 }
 0xb28   : > { %1204 = vrot.lane.b32.xlu1 %v4757_v20, %s4280_s18 }
 0xb2b   : > { %v1386_v57 = vpop.permute.xlu0 %1385 }
 0xb2e   : > { %2398 = vrot.lane.b32.xlu0 %v4582_v44, %s4279_s22 }
 0xb2f   : > { %v1500_v59 = vpop.permute.xlu0 %1499 }
 0xb4f   : > { %v1834_v47 = vpop.xlane.xlu1 %1833 }
 0xb53   : > { %v1267_v49 = vpop.xlane.xlu1 %1266 }
 0xb54   : > { %4033 = vrcp.f32 %v1267_v49 }
 0xb55   : > { %4035 = vrcp.f32 %v1381_v38 }
 0xb56   : > { %4037 = vrcp.f32 %v1495_v41 }
 0xb57   : > { %4039 = vrcp.f32 %v1609_v50  ;;  %v1614_v0 = vpop.permute.xlu1 %1613 }
 0xb58   : > { %4041 = vrcp.f32 %v1723_v22 }
 0xb59   : > { %4043 = vrcp.f32 %v1834_v47 }
 0xb5e   : > { %v4034_v51 = vpop.eup %4033 }
 0xb5f   : > { %v1269_v54 = vmul.f32 %v4034_v51, %v4845_v6  ;;  %v4036_v56 = vpop.eup %4035 }
 0xb60   : > { %v1383_v25 = vmul.f32 %v4036_v56, %v4813_v42  ;;  %v4038_v48 = vpop.eup %4037  ;;  %v1941_v61 = vpop.xlane.xlu0 %1940 }
 0xb61   : > { %v1270_v33 = vpack.c.bf16 %v1269_v54, %v1269_v54  ;;  %v1497_v60 = vmul.f32 %v4038_v48, %v4819_v52  ;;  %v4040_v42 = vpop.eup %4039  ;;  %4045 = vrcp.f32 %v1941_v61 }
 0xb62   : > { %v1384_v20 = vpack.c.bf16 %v1383_v25, %v1383_v25  ;;  %v1611_v1 = vmul.f32 %v4040_v42, %v4823_v55  ;;  %v4042_v4 = vpop.eup %4041 }
 0xb63   : > { %3665 = vmatmul.mubr.msk.bf16.vlgmr.msra.gmra.mrb[32].mxu1 %vm875_vm1, %v1270_v33  ;;  %v1498_v62 = vpack.c.bf16 %v1497_v60, %v1497_v60  ;;  %v1725_v31 = vmul.f32 %v4042_v4, %v4827_v40  ;;  %v4044_v55 = vpop.eup %4043 }
 0xb64   : > { %3675 = vmatpush3.bf16.msra.mxu1 %v1386_v57  ;;  %3676 = vmatprep.mubr.msk.bf16.mxu1 %vm4274_vm0, %v4273_v5  ;;  %v2055_v2 = vpop.xlane.xlu0 %2054  ;;  %v1612_v52 = vpack.c.bf16 %v1611_v1, %v1611_v1  ;;  %v1836_v7 = vmul.f32 %v4044_v55, %v4840_v43 }
 0xb65   : > { %3686 = vmatprep.subr.bf16.mxu1 %v4273_v5  ;;  %v1726_v6 = vpack.c.bf16 %v1725_v31, %v1725_v31  ;;  %4047 = vrcp.f32 %v2055_v2 }
 0xb66   : > { %v1837_v10 = vpack.c.bf16 %v1836_v7, %v1836_v7 }
 0xb68   : > { %v1728_v53 = vpop.permute.xlu0 %1727 }
 0xb6b   : > { %3677 = vmatmul.mubr.msk.bf16.vlgmr.msra.gmra.mrb[36].mxu1 %vm875_vm1, %v1384_v20  ;;  %v4046_v40 = vpop.eup %4045 }
 0xb6c   : > { %3687 = vmatpush3.bf16.msra.mxu1 %v1500_v59  ;;  %3688 = vmatprep.mubr.msk.bf16.mxu1 %vm4274_vm0, %v4273_v5  ;;  %v1943_v12 = vmul.f32 %v4046_v40, %v4849_v58 }
 0xb6d   : > { %3698 = vmatprep.subr.bf16.mxu1 %v4273_v5 }
 0xb6e   : > { %v1944_v43 = vpack.c.bf16 %v1943_v12, %v1943_v12 }
 0xb6f   : > { %v4048_v13 = vpop.eup %4047 }
 0xb70   : > { %v2057_v16 = vmul.f32 %v4048_v13, %v4853_v11 }
 0xb72   : > { %v2058_v21 = vpack.c.bf16 %v2057_v16, %v2057_v16 }
 0xb73   : > { %3689 = vmatmul.mubr.msk.bf16.vlgmr.msra.gmra.mrb[40].mxu1 %vm875_vm1, %v1498_v62 }
 0xb74   : > { %3699 = vmatpush3.bf16.msra.mxu1 %v1614_v0  ;;  %3700 = vmatprep.mubr.msk.bf16.mxu1 %vm4274_vm0, %v4273_v5 }
 0xb75   : > { %3710 = vmatprep.subr.bf16.mxu1 %v4273_v5 }
 0xb7b   : > { %3701 = vmatmul.mubr.msk.bf16.vlgmr.msra.gmra.mrb[44].mxu1 %vm875_vm1, %v1612_v52 }
 0xb7c   : > { %3711 = vmatpush3.bf16.msra.mxu1 %v1728_v53  ;;  %3712 = vmatprep.mubr.msk.bf16.mxu1 %vm4274_vm0, %v4273_v5 }
 0xb7d   : > { %3722 = vmatprep.subr.bf16.mxu1 %v4273_v5 }
 0xb83   : > { %3713 = vmatmul.mubr.msk.bf16.vlgmr.msra.gmra.mrb[48].mxu1 %vm875_vm1, %v1726_v6 }
 0xb84   : > { %3723 = vmatpush3.bf16.msra.mxu1 %v4582_v44  ;;  %3724 = vmatprep.mubr.msk.bf16.mxu1 %vm4274_vm0, %v4273_v5 }
 0xb85   : > { %3734 = vmatprep.subr.bf16.mxu1 %v4273_v5 }
 0xb88   : > { %v2168_v8 = vpop.xlane.xlu1 %2167 }
 0xb89   : > { %4049 = vrcp.f32 %v2168_v8 }
 0xb8b   : > { %3725 = vmatmul.mubr.msk.bf16.vlgmr.msra.gmra.mrb[52].mxu1 %vm875_vm1, %v1837_v10 }
 0xb8c   : > { %v1947_v63 = vpop.permute.xlu1 %1946  ;;  %3736 = vmatprep.mubr.msk.bf16.mxu1 %vm4274_vm0, %v4273_v5 }
 0xb8d   : > { %3735 = vmatpush3.bf16.msra.mxu1 %v1947_v63 }
 0xb8e   : > { %3746 = vmatprep.subr.bf16.mxu1 %v4273_v5 }
 0xb90   : > { %v2060_v44 = vpop.permute.xlu1 %2059 }
 0xb93   : > { %3737 = vmatmul.mubr.msk.bf16.vlgmr.msra.gmra.mrb[56].mxu1 %vm875_vm1, %v1944_v43  ;;  %v4050_v23 = vpop.eup %4049  ;;  %v3940_v43 = vld [vmem:[#allocation8 + $0x8] sm:$0xff]  }
 0xb94   : > { %3747 = vmatpush3.bf16.msra.mxu1 %v2060_v44  ;;  %v2173_v15 = vpop.permute.xlu1 %2172  ;;  %3748 = vmatprep.mubr.msk.bf16.mxu1 %vm4274_vm0, %v4273_v5  ;;  %v2170_v27 = vmul.f32 %v4050_v23, %v4863_v18  ;;  %v3939_v44 = vld [vmem:[#allocation8] sm:$0xff]  }
 0xb95   : > { %3758 = vmatprep.subr.bf16.mxu1 %v4273_v5  ;;  %3813 = vmatpush3.bf16.msra.mxu0 %v3939_v44  ;;  %v3958_v44 = vld [vmem:[%s5075_s6 + $0x34] ss:$8 sps:$4 sm:$0xff]  }
 0xb96   : > { %v2171_v30 = vpack.c.bf16 %v2170_v27, %v2170_v27  ;;  %3814 = vmatprep.subr.bf16.mxu0 %v4273_v5 }
 0xb98   : > { %v2286_v17 = vpop.permute.xlu1 %2285 }
 0xb99   : > { %v2281_v58 = vpop.xlane.xlu0 %2280  ;;  %3815 = vmatpush3.bf16.msra.mxu0 %v3940_v43  ;;  %v3956_v43 = vld [vmem:[%s5075_s6 + $0x30] ss:$8 sps:$4 sm:$0xff]  }
 0xb9a   : > { %4051 = vrcp.f32 %v2281_v58  ;;  %3816 = vmatprep.subr.bf16.mxu0 %v4273_v5  ;;  %v3941_v58 = vld [vmem:[#allocation8 + $0x10] sm:$0xff]  }
 0xb9b   : > { %3749 = vmatmul.mubr.msk.bf16.vlgmr.msra.gmra.mrb[60].mxu1 %vm875_vm1, %v2058_v21  ;;  %v3942_v21 = vld [vmem:[#allocation8 + $0x18] sm:$0xff]  }
 0xb9c   : > { %3759 = vmatpush3.bf16.msra.mxu1 %v2173_v15  ;;  %v2512_v26 = vpop.permute.xlu1 %2511  ;;  %3760 = vmatprep.mubr.msk.bf16.mxu1 %vm4274_vm0, %v4273_v5 }
 0xb9d   : > { %v2394_v29 = vpop.xlane.xlu0 %2393  ;;  %3770 = vmatprep.subr.bf16.mxu1 %v4273_v5  ;;  %3817 = vmatpush3.bf16.msra.mxu0 %v3941_v58  ;;  %v3967_v58 = vld [vmem:[%s5075_s6 + $0x64] ss:$8 sps:$4 sm:$0xff]  }
 0xb9e   : > { %4053 = vrcp.f32 %v2394_v29  ;;  %3818 = vmatprep.subr.bf16.mxu0 %v4273_v5 }
 0xba0   : > { %v2625_v11 = vpop.permute.xlu1 %2624 }
 0xba1   : > { %v2507_v3 = vpop.xlane.xlu0 %2506  ;;  %3819 = vmatpush3.bf16.msra.mxu0 %v3942_v21  ;;  %v3965_v21 = vld [vmem:[%s5075_s6 + $0x60] ss:$8 sps:$4 sm:$0xff]  }
 0xba2   : > { %4055 = vrcp.f32 %v2507_v3  ;;  %3820 = vmatprep.subr.bf16.mxu0 %v4273_v5  ;;  %v3944_v3 = vld [vmem:[#allocation8 + $0x28] sm:$0xff]  }
 0xba3   : > { %3761 = vmatmul.mubr.msk.bf16.vlgmr.msra.gmra.mrb[64].mxu1 %vm875_vm1, %v2171_v30 }
 0xba4   : > { %v4052_v32 = vpop.eup %4051  ;;  %3771 = vmatpush3.bf16.msra.mxu1 %v2286_v17  ;;  %v1091_v46 = vpop.permute.xlu1 %1090  ;;  %3772 = vmatprep.mubr.msk.bf16.mxu1 %vm4274_vm0, %v4273_v5 }
 0xba5   : > { %v2283_v9 = vmul.f32 %v4052_v32, %v4870_v24  ;;  %1094 = vst.msk [vmem:[#allocation2] sm:$0xff] %vm1093_vm2, %v1091_v46  ;;  %v2620_v18 = vpop.xlane.xlu0 %2619  ;;  %3782 = vmatprep.subr.bf16.mxu1 %v4273_v5 }
 0xba6   : > { %4057 = vrcp.f32 %v2620_v18  ;;  %v3945_v18 = vld [vmem:[#allocation8 + $0x30] sm:$0xff]  }
 0xba7   : > { %v2284_v19 = vpack.c.bf16 %v2283_v9, %v2283_v9 }
 0xba8   : > { %v1205_v34 = vpop.permute.xlu1 %1204  ;;  %v4054_v28 = vpop.eup %4053 }
 0xba9   : > { %1208 = vst.msk [vmem:[#allocation2] sm:$0xff] %vm1207_vm3, %v1205_v34  ;;  %v2399_v14 = vpop.permute.xlu0 %2398  ;;  %v2396_v24 = vmul.f32 %v4054_v28, %v4874_v35  ;;  %v3946_v34 = vld [vmem:[#allocation8 + $0x38] sm:$0xff]  }
 0xbab   : > { %3773 = vmatmul.mubr.msk.bf16.vlgmr.msra.gmra.mrb[68].mxu1 %vm875_vm1, %v2284_v19  ;;  %v2397_v38 = vpack.c.bf16 %v2396_v24, %v2396_v24 }
 0xbac   : > { %3783 = vmatpush3.bf16.msra.mxu1 %v2399_v14  ;;  %3784 = vmatprep.mubr.msk.bf16.mxu1 %vm4274_vm0, %v4273_v5  ;;  %v4056_v39 = vpop.eup %4055 }
 0xbad   : > { %3794 = vmatprep.subr.bf16.mxu1 %v4273_v5  ;;  %v2509_v41 = vmul.f32 %v4056_v39, %v4880_v36 }
 0xbaf   : > { %v2510_v45 = vpack.c.bf16 %v2509_v41, %v2509_v41 }
 0xbb0   : > { %v4058_v47 = vpop.eup %4057 }
 0xbb1   : > { %v2622_v35 = vmul.f32 %v4058_v47, %v4886_v37 }
 0xbb3   : > { %3785 = vmatmul.mubr.msk.bf16.vlgmr.msra.gmra.mrb[72].mxu1 %vm875_vm1, %v2397_v38  ;;  %v2623_v49 = vpack.c.bf16 %v2622_v35, %v2622_v35 }
 0xbb4   : > { %3795 = vmatpush3.bf16.msra.mxu1 %v2512_v26  ;;  %3796 = vmatprep.mubr.msk.bf16.mxu1 %vm4274_vm0, %v4273_v5 }
 0xbb5   : > { %3806 = vmatprep.subr.bf16.mxu1 %v4273_v5 }
 0xbbb   : > { %3797 = vmatmul.mubr.msk.bf16.vlgmr.msra.gmra.mrb[76].mxu1 %vm875_vm1, %v2510_v45 }
 0xbbc   : > { %3807 = vmatpush3.bf16.msra.mxu1 %v2625_v11  ;;  %3808 = vmatprep.mubr.msk.bf16.mxu1 %vm4274_vm0, %v4273_v5  ;;  %v3943_v11 = vld [vmem:[#allocation8 + $0x20] sm:$0xff]  }
 0xbbd   : > { %3821 = vmatpush3.bf16.msra.mxu0 %v3943_v11 }
 0xbbe   : > { %3822 = vmatprep.subr.bf16.mxu0 %v4273_v5 }
 0xbc1   : > { %3823 = vmatpush3.bf16.msra.mxu0 %v3944_v3 }
 0xbc2   : > { %3824 = vmatprep.subr.bf16.mxu0 %v4273_v5 }
 0xbc3   : > { %3809 = vmatmul.mubr.msk.bf16.vlgmr.msra.gmra.mrb[80].mxu1 %vm875_vm1, %v2623_v49 }
 0xbc5   : > { %3825 = vmatpush3.bf16.msra.mxu0 %v3945_v18 }
 0xbc6   : > { %3826 = vmatprep.subr.bf16.mxu0 %v4273_v5 }
 0xbc9   : > { %3827 = vmatpush3.bf16.msra.mxu0 %v3946_v34  ;;  %v3399_v34 = vld [vmem:[#allocation11 + $0x6] ss:$0 sm:$0xff] }
 0xc36   : > { %v1311_v50 = vpop.f32.mrb[32].mxu1 }
 0xc37   : > { %1318 = vrot.lane.b32.xlu0 %v1311_v50, %s4279_s22  ;;  %v3666_v22 = vpop.f32.mrb[33].mxu1 }
 0xc38   : > { %v1314_v36 = vpop.f32.mrb[34].mxu1 }
 0xc39   : > { %v3667_v51 = vpop.f32.mrb[35].mxu1 }
 0xc3e   : > { %v1425_v54 = vpop.f32.mrb[36].mxu1 }
 0xc3f   : > { %1432 = vrot.lane.b32.xlu0 %v1425_v54, %s4278_s16  ;;  %v3678_v33 = vpop.f32.mrb[37].mxu1 }
 0xc40   : > { %v1428_v56 = vpop.f32.mrb[38].mxu1 }
 0xc41   : > { %v3679_v57 = vpop.f32.mrb[39].mxu1 }
 0xc46   : > { %v1539_v25 = vpop.f32.mrb[40].mxu1 }
 0xc47   : > { %1546 = vrot.lane.b32.xlu0 %v1539_v25, %s4277_s12  ;;  %v3690_v20 = vpop.f32.mrb[41].mxu1 }
 0xc48   : > { %v1542_v37 = vpop.f32.mrb[42].mxu1 }
 0xc49   : > { %v3691_v48 = vpop.f32.mrb[43].mxu1 }
 0xc4a   : > { %v3390_v48 = vld [vmem:[#allocation11 + $0x5] ss:$0 sm:$0xff] }
 0xc4e   : > { %v1653_v59 = vpop.f32.mrb[44].mxu1 }
 0xc4f   : > { %1660 = vrot.lane.b32.xlu0 %v1653_v59, %s4276_s11  ;;  %v3702_v60 = vpop.f32.mrb[45].mxu1 }
 0xc50   : > { %v1656_v61 = vpop.f32.mrb[46].mxu1 }
 0xc51   : > { %v3703_v62 = vpop.f32.mrb[47].mxu1 }
 0xc56   : > { %v1767_v42 = vpop.f32.mrb[48].mxu1 }
 0xc57   : > { %1774 = vrot.lane.b32.xlu0 %v1767_v42, %s4275_s29  ;;  %v3714_v0 = vpop.f32.mrb[49].mxu1 }
 0xc58   : > { %v1770_v1 = vpop.f32.mrb[50].mxu1 }
 0xc59   : > { %v3715_v2 = vpop.f32.mrb[51].mxu1  ;;  %v3947_v1 = vld [vmem:[%s5075_s6] ss:$8 sps:$4 sm:$0xff]  }
 0xc5a   : > { %v3949_v2 = vld [vmem:[%s5075_s6 + $0x4] ss:$8 sps:$4 sm:$0xff]  }
 0xc5b   : > { %2933 = vmatprep.subr.bf16.mxu1 %v3949_v2 }
 0xc5c   : > { %2934 = vmatpush1.bf16.msra.mxu1 %v3947_v1 }
 0xc5e   : > { %v1875_v52 = vpop.f32.mrb[52].mxu1 }
 0xc5f   : > { %1881 = vst.msk [vmem:[#allocation2 + $0x8] sm:$0xff] %vm875_vm1, %v1875_v52  ;;  %v3726_v4 = vpop.f32.mrb[53].mxu1  ;;  %v3952_v52 = vld [vmem:[%s5075_s6 + $0x14] ss:$8 sps:$4 sm:$0xff]  }
 0xc60   : > { %v1878_v53 = vpop.f32.mrb[54].mxu1  ;;  %v3950_v4 = vld [vmem:[%s5075_s6 + $0x10] ss:$8 sps:$4 sm:$0xff]   ;;  %2935 = vmatprep.subr.bf16.mxu1 %v3952_v52 }
 0xc61   : > { %v3727_v31 = vpop.f32.mrb[55].mxu1  ;;  %2936 = vmatpush1.bf16.msra.mxu1 %v3950_v4 }
 0xc66   : > { %v1986_v6 = vpop.f32.mrb[56].mxu1 }
 0xc67   : > { %1993 = vrot.lane.b32.xlu1 %v1986_v6, %s4281_s21  ;;  %v3738_v55 = vpop.f32.mrb[57].mxu1 }
 0xc68   : > { %v1989_v7 = vpop.f32.mrb[58].mxu1 }
 0xc69   : > { %v3739_v8 = vpop.f32.mrb[59].mxu1 }
 0xc6e   : > { %v2099_v10 = vpop.f32.mrb[60].mxu1 }
 0xc6f   : > { %2106 = vrot.lane.b32.xlu1 %v2099_v10, %s4280_s18  ;;  %v3750_v40 = vpop.f32.mrb[61].mxu1  ;;  %s3327_s18 = sshll.u32 %s4344_s14, 1 }
 0xc70   : > { %v2102_v63 = vpop.f32.mrb[62].mxu1  ;;  %p446_p9 = scmp.lt.s32.totalorder %s3327_s18, 3 }
 0xc71   : > { %v3751_v12 = vpop.f32.mrb[63].mxu1  ;;  %v3955_v63 = vld [vmem:[%s5075_s6 + $0x24] ss:$8 sps:$4 sm:$0xff]  }
 0xc72   : > { %v3953_v12 = vld [vmem:[%s5075_s6 + $0x20] ss:$8 sps:$4 sm:$0xff]   ;;  %2937 = vmatprep.subr.bf16.mxu1 %v3955_v63  ;;  %s5097_s18 = smov (!%p446_p9, %s3327_s18), 3 }
 0xc73   : > { %2938 = vmatpush1.bf16.msra.mxu1 %v3953_v12  ;;  %s3328_s21 = sshll.u32 %s5097_s18, 3 }
 0xc74   : > { %2939 = vmatprep.subr.bf16.mxu1 %v3958_v44  ;;  %s449_s15 = scalar_lea.vmem %s5079_s10, %s3328_s21 }
 0xc76   : > { %v2212_v13 = vpop.f32.mrb[64].mxu1 }
 0xc77   : > { %2219 = vrot.lane.b32.xlu1 %v2212_v13, %s4279_s22  ;;  %v3762_v15 = vpop.f32.mrb[65].mxu1  ;;  %2940 = vmatpush1.bf16.msra.mxu1 %v3956_v43  ;;  %v3961_v13 = vld [vmem:[%s5075_s6 + $0x44] ss:$8 sps:$4 sm:$0xff]  }
 0xc78   : > { %v2215_v16 = vpop.f32.mrb[66].mxu1  ;;  %v3959_v15 = vld [vmem:[%s5075_s6 + $0x40] ss:$8 sps:$4 sm:$0xff]   ;;  %2941 = vmatprep.subr.bf16.mxu1 %v3961_v13 }
 0xc79   : > { %v3763_v17 = vpop.f32.mrb[67].mxu1  ;;  %v3964_v16 = vld [vmem:[%s5075_s6 + $0x54] ss:$8 sps:$4 sm:$0xff]  }
 0xc7a   : > { %v3962_v17 = vld [vmem:[%s5075_s6 + $0x50] ss:$8 sps:$4 sm:$0xff]  }
 0xc7b   : > { %2942 = vmatpush1.bf16.msra.mxu1 %v3959_v15 }
 0xc7c   : > { %2943 = vmatprep.subr.bf16.mxu1 %v3964_v16 }
 0xc7e   : > { %v2325_v23 = vpop.f32.mrb[68].mxu1 }
 0xc7f   : > { %2332 = vrot.lane.b32.xlu1 %v2325_v23, %s4278_s16  ;;  %v3774_v26 = vpop.f32.mrb[69].mxu1  ;;  %2944 = vmatpush1.bf16.msra.mxu1 %v3962_v17  ;;  %v3970_v23 = vld [vmem:[%s5075_s6 + $0x74] ss:$8 sps:$4 sm:$0xff]  }
 0xc80   : > { %v2328_v27 = vpop.f32.mrb[70].mxu1  ;;  %2945 = vmatprep.subr.bf16.mxu1 %v3967_v58  ;;  %v3968_v26 = vld [vmem:[%s5075_s6 + $0x70] ss:$8 sps:$4 sm:$0xff]  }
 0xc81   : > { %v3775_v29 = vpop.f32.mrb[71].mxu1  ;;  %v4282_v27 = vmov 0  }
 0xc82   : > { %2965 = vmatprep.mubr.bf16.mxu1 %v4282_v27 }
 0xc83   : > { %2946 = vmatpush1.bf16.msra.mxu1 %v3965_v21 }
 0xc84   : > { %2947 = vmatprep.subr.bf16.mxu1 %v3970_v23 }
 0xc86   : > { %v2438_v30 = vpop.f32.mrb[72].mxu1 }
 0xc87   : > { %2445 = vrot.lane.b32.xlu1 %v2438_v30, %s4277_s12  ;;  %v3786_v32 = vpop.f32.mrb[73].mxu1  ;;  %2948 = vmatpush1.bf16.msra.mxu1 %v3968_v26 }
 0xc88   : > { %v2441_v46 = vpop.f32.mrb[74].mxu1 }
 0xc89   : > { %v3787_v9 = vpop.f32.mrb[75].mxu1 }
 0xc8e   : > { %v2551_v14 = vpop.f32.mrb[76].mxu1 }
 0xc8f   : > { %2558 = vrot.lane.b32.xlu1 %v2551_v14, %s4276_s11  ;;  %v3798_v19 = vpop.f32.mrb[77].mxu1 }
 0xc90   : > { %v2554_v28 = vpop.f32.mrb[78].mxu1 }
 0xc91   : > { %v3799_v24 = vpop.f32.mrb[79].mxu1 }
 0xc92   : > { %v3400_v24 = vld [vmem:[#allocation11 + $0x7] ss:$0 sm:$0xff] }
 0xc96   : > { %v2664_v38 = vpop.f32.mrb[80].mxu1 }
 0xc97   : > { %2671 = vrot.lane.b32.xlu1 %v2664_v38, %s4275_s29  ;;  %v3810_v39 = vpop.f32.mrb[81].mxu1 }
 0xc98   : > { %v2667_v41 = vpop.f32.mrb[82].mxu1 }
 0xc99   : > { %v3811_v45 = vpop.f32.mrb[83].mxu1 }
 0xca9   : > { %v1319_v47 = vpop.permute.xlu0 %1318 }
 0xcaa   : > { %1322 = vst.msk [vmem:[#allocation2] sm:$0xff] %vm1321_vm4, %v1319_v47  ;;  %v3971_v47 = vld [vmem:[#allocation10 + $0x40] sm:$0xff]  }
 0xcab   : > { %3538 = vmatprep.subr.bf16.mxu0 %v3971_v47 }
 0xcb1   : > { %v1433_v35 = vpop.permute.xlu0 %1432 }
 0xcb2   : > { %1436 = vst.msk [vmem:[#allocation2] sm:$0xff] %vm1435_vm5, %v1433_v35  ;;  %v3972_v35 = vld [vmem:[#allocation10] sm:$0xff]  }
 0xcb9   : > { %v1547_v5 = vpop.permute.xlu0 %1546 }
 0xcba   : > { %1550 = vst.msk [vmem:[#allocation2] sm:$0xff] %vm1549_vm6, %v1547_v5  ;;  %v3973_v5 = vld [vmem:[#allocation10 + $0x48] sm:$0xff]  }
 0xcc1   : > { %v1661_v49 = vpop.permute.xlu0 %1660 }
 0xcc2   : > { %1664 = vst.msk [vmem:[#allocation2] sm:$0xff] %vm1663_vm7, %v1661_v49  ;;  %v3974_v49 = vld [vmem:[#allocation10 + $0x8] sm:$0xff]  }
 0xcc9   : > { %v1775_v50 = vpop.permute.xlu0 %1774 }
 0xcca   : > { %1778 = vst.msk [vmem:[#allocation2] sm:$0xff] %vm1777_vm8, %v1775_v50  ;;  %v3975_v50 = vld [vmem:[#allocation10 + $0x50] sm:$0xff]  }
 0xcd1   : > { %v2675_v25 = vld [vmem:[#allocation2] sm:$0xff] }
 0xcd9   : > { %v1994_v22 = vpop.permute.xlu1 %1993 }
 0xcda   : > { %1996 = vst.msk [vmem:[#allocation2 + $0x8] sm:$0xff] %vm1093_vm2, %v1994_v22  ;;  %v3976_v22 = vld [vmem:[#allocation10 + $0x10] sm:$0xff]  }
 0xce1   : > { %v2107_v36 = vpop.permute.xlu1 %2106 }
 0xce2   : > { %2109 = vst.msk [vmem:[#allocation2 + $0x8] sm:$0xff] %vm1207_vm3, %v2107_v36  ;;  %v3977_v36 = vld [vmem:[#allocation10 + $0x58] sm:$0xff]  }
 0xce9   : > { %v2220_v51 = vpop.permute.xlu1 %2219 }
 0xcea   : > { %2222 = vst.msk [vmem:[#allocation2 + $0x8] sm:$0xff] %vm1321_vm4, %v2220_v51  ;;  %v3978_v51 = vld [vmem:[#allocation10 + $0x18] sm:$0xff]  }
 0xcf1   : > { %v2333_v54 = vpop.permute.xlu1 %2332 }
 0xcf2   : > { %2335 = vst.msk [vmem:[#allocation2 + $0x8] sm:$0xff] %vm1435_vm5, %v2333_v54  ;;  %v3979_v54 = vld [vmem:[#allocation10 + $0x60] sm:$0xff]  }
 0xcf9   : > { %v2446_v33 = vpop.permute.xlu1 %2445 }
 0xcfa   : > { %2448 = vst.msk [vmem:[#allocation2 + $0x8] sm:$0xff] %vm1549_vm6, %v2446_v33  ;;  %v3980_v33 = vld [vmem:[#allocation10 + $0x20] sm:$0xff]  }
 0xd01   : > { %v2559_v56 = vpop.permute.xlu1 %2558 }
 0xd02   : > { %2561 = vst.msk [vmem:[#allocation2 + $0x8] sm:$0xff] %vm1663_vm7, %v2559_v56  ;;  %v3981_v56 = vld [vmem:[#allocation10 + $0x68] sm:$0xff]  }
 0xd09   : > { %v2672_v57 = vpop.permute.xlu1 %2671 }
 0xd0a   : > { %2674 = vst.msk [vmem:[#allocation2 + $0x8] sm:$0xff] %vm1777_vm8, %v2672_v57  ;;  %v3982_v57 = vld [vmem:[#allocation10 + $0x28] sm:$0xff]  }
 0xd11   : > { %v2676_v20 = vld [vmem:[#allocation2 + $0x8] sm:$0xff] }
 0xd12   : > { %v2677_v37 = vpack.c.bf16 %v2676_v20, %v2675_v25  ;;  %v3983_v25 = vld [vmem:[#allocation10 + $0x70] sm:$0xff]  }
 0xd13   : > { %v3984_v20 = vld [vmem:[#allocation10 + $0x30] sm:$0xff]  }
 0xd14   : > { %3829 = vmatmul.mubr.bf16.vlgmr.msra.gmra.mrb[56].mxu0 %v2677_v37  ;;  %v3985_v37 = vld [vmem:[#allocation10 + $0x78] sm:$0xff]  }
 0xd15   : > { %3539 = vmatpush3.bf16.msra.mxu0 %v3972_v35 }
 0xd16   : > { %3540 = vmatprep.subr.bf16.mxu0 %v3973_v5 }
 0xd19   : > { %3541 = vmatpush3.bf16.msra.mxu0 %v3974_v49 }
 0xd1a   : > { %3542 = vmatprep.subr.bf16.mxu0 %v3975_v50 }
 0xd1d   : > { %3543 = vmatpush3.bf16.msra.mxu0 %v3976_v22 }
 0xd1e   : > { %3544 = vmatprep.subr.bf16.mxu0 %v3977_v36 }
 0xd21   : > { %3545 = vmatpush3.bf16.msra.mxu0 %v3978_v51 }
 0xd22   : > { %3546 = vmatprep.subr.bf16.mxu0 %v3979_v54  ;;  %v3417_v54 = vld [vmem:[#allocation11 + $0x8] ss:$0 sm:$0xff] }
 0xd25   : > { %3547 = vmatpush3.bf16.msra.mxu0 %v3980_v33 }
 0xd26   : > { %3548 = vmatprep.subr.bf16.mxu0 %v3981_v56 }
 0xd29   : > { %3549 = vmatpush3.bf16.msra.mxu0 %v3982_v57 }
 0xd2a   : > { %3550 = vmatprep.subr.bf16.mxu0 %v3983_v25 }
 0xd2d   : > { %3551 = vmatpush3.bf16.msra.mxu0 %v3984_v20 }
 0xd2e   : > { %3552 = vmatprep.subr.bf16.mxu0 %v3985_v37 }
 0xde7   : > { %v2781_v59 = vpop.f32.mrb[56].mxu0 }
 0xde8   : > { %v5001_v60 = vadd.f32 %v3390_v48, %v2781_v59  ;;  %v3830_v61 = vpop.f32.mrb[57].mxu0  ;;  %v2843_v59 = vlaneseq }
 0xde9   : > { %v2784_v62 = vpop.f32.mrb[58].mxu0 }
 0xdea   : > { %v5003_v42 = vadd.f32 %v3390_v48, %v2784_v62  ;;  %2790 = vadd.xlane.f32.xlu0 %v5001_v60  ;;  %v3831_v0 = vpop.f32.mrb[59].mxu0  ;;  %v3986_v48 = vld [vmem:[#allocation10 + $0x38] sm:$0xff]   ;;  %v2844_v61 = vshrl.u32 %v2843_v59, 7 }
 0xdeb   : > { %3553 = vmatpush3.bf16.msra.mxu0 %v3986_v48  ;;  %v2841_v0 = vld [vmem:[%s5078_s9] sm:$0x3] }
 0xdec   : > { %2792 = vadd.xlane.f32.xlu1 %v5003_v42  ;;  %v2845_v62 = vsub.s32 0, %v2844_v61  ;;  %v2849_v1 = vsub.s32 1, %v2844_v61 }
 0xdee   : > { %v2846_v2 = vrot.slane %v2841_v0, %v2845_v62  ;;  %v2850_v52 = vrot.slane %v2841_v0, %v2849_v1 }
 0xe77   : > { %v2791_v53 = vpop.xlane.xlu0 %2790 }
 0xe78   : > { %v2794_v31 = vmul.f32 0.0078125, %v2791_v53 }
 0xe79   : > { %v2793_v6 = vpop.xlane.xlu1 %2792 }
 0xe7a   : > { %v2796_v55 = vsub.f32 %v5001_v60, %v2794_v31  ;;  %v2795_v7 = vmul.f32 0.0078125, %v2793_v6 }
 0xe7c   : > { %v2797_v8 = vsub.f32 %v5003_v42, %v2795_v7  ;;  %v2798_v10 = vmul.f32 %v2796_v55, %v2796_v55 }
 0xe7e   : > { %2800 = vadd.xlane.f32.xlu0 %v2798_v10  ;;  %v2799_v40 = vmul.f32 %v2797_v8, %v2797_v8 }
 0xe82   : > { %2802 = vadd.xlane.f32.xlu0 %v2799_v40 }
 0xf0b   : > { %v2801_v29 = vpop.xlane.xlu0 %2800 }
 0xf0c   : > { %v2804_v11 = vmul.f32 0.0078125, %v2801_v29 }
 0xf0e   : > { %v2806_v3 = vadd.f32 1e-05, %v2804_v11 }
 0xf0f   : > { %v2803_v30 = vpop.xlane.xlu0 %2802 }
 0xf10   : > { %4059 = vrsqrt.f32 %v2806_v3  ;;  %v2805_v32 = vmul.f32 0.0078125, %v2803_v30 }
 0xf12   : > { %v2807_v46 = vadd.f32 1e-05, %v2805_v32 }
 0xf14   : > { %4061 = vrsqrt.f32 %v2807_v46 }
 0xf1a   : > { %v4060_v9 = vpop.eup %4059 }
 0xf1b   : > { %v2810_v18 = vmul.f32 %v4060_v9, %v2796_v55 }
 0xf1d   : > { %v2816_v28 = vmul.f32 %v3399_v34, %v2810_v18 }
 0xf1e   : > { %v4062_v14 = vpop.eup %4061 }
 0xf1f   : > { %v2811_v19 = vmul.f32 %v4062_v14, %v2797_v8  ;;  %v2822_v39 = vadd.f32 %v3400_v24, %v2816_v28 }
 0xf21   : > { %v2817_v38 = vmul.f32 %v3399_v34, %v2811_v19 }
 0xf23   : > { %v2823_v41 = vadd.f32 %v3400_v24, %v2817_v38 }
 0xf25   : > { %v2824_v45 = vpack.c.bf16 %v2823_v41, %v2822_v39 }
 0xf27   : > { %2966 = vmatmul.mubr.bf16.vlgmr.msra.gmra.mrb[84].mxu1 %v2824_v45 }
 0xffa   : > { %v2967_v4 = vpop.f32.mrb[84].mxu1 }
 0xffb   : > { %v2968_v53 = vadd.f32 %v2967_v4, %v2846_v2  ;;  %v2969_v31 = vpop.f32.mrb[85].mxu1 }
 0xffc   : > { %v2970_v6 = vadd.f32 %v2969_v31, %v2850_v52  ;;  %v2971_v55 = vpop.f32.mrb[86].mxu1 }
 0xffd   : > { %v2980_v7 = vmul.f32 %v2968_v53, %v2968_v53  ;;  %v2972_v8 = vadd.f32 %v2971_v55, %v2846_v2  ;;  %v2973_v10 = vpop.f32.mrb[87].mxu1  ;;  %v2976_v24 = vmul.f32 0.5, %v2968_v53 }
 0xffe   : > { %v2981_v40 = vmul.f32 %v2970_v6, %v2970_v6  ;;  %v2974_v63 = vadd.f32 %v2973_v10, %v2850_v52  ;;  %v2977_v41 = vmul.f32 0.5, %v2970_v6 }
 0xfff   : > { %v2984_v12 = vmul.f32 %v2980_v7, %v2968_v53  ;;  %v2982_v44 = vmul.f32 %v2972_v8, %v2972_v8  ;;  %v2978_v38 = vmul.f32 0.5, %v2972_v8 }
0x1000   : > { %v2985_v43 = vmul.f32 %v2981_v40, %v2970_v6  ;;  %v2983_v13 = vmul.f32 %v2974_v63, %v2974_v63  ;;  %v2979_v45 = vmul.f32 0.5, %v2974_v63 }
0x1001   : > { %v2988_v15 = vmul.f32 0.044715, %v2984_v12  ;;  %v2986_v16 = vmul.f32 %v2982_v44, %v2972_v8 }
0x1002   : > { %v2989_v17 = vmul.f32 0.044715, %v2985_v43  ;;  %v2987_v58 = vmul.f32 %v2983_v13, %v2974_v63 }
0x1003   : > { %v2992_v21 = vadd.f32 %v2988_v15, %v2968_v53  ;;  %v2990_v23 = vmul.f32 0.044715, %v2986_v16 }
0x1004   : > { %v2993_v26 = vadd.f32 %v2989_v17, %v2970_v6  ;;  %v2991_v27 = vmul.f32 0.044715, %v2987_v58 }
0x1005   : > { %v2996_v29 = vmul.f32 0.7978846, %v2992_v21  ;;  %v2994_v11 = vadd.f32 %v2990_v23, %v2972_v8 }
0x1006   : > { %v2997_v3 = vmul.f32 0.7978846, %v2993_v26  ;;  %v2995_v30 = vadd.f32 %v2991_v27, %v2974_v63 }
0x1007   : > { %4063 = vtanh.f32 %v2996_v29  ;;  %v2998_v32 = vmul.f32 0.7978846, %v2994_v11 }
0x1008   : > { %4065 = vtanh.f32 %v2997_v3  ;;  %v2999_v46 = vmul.f32 0.7978846, %v2995_v30 }
0x1009   : > { %4067 = vtanh.f32 %v2998_v32 }
0x100a   : > { %4069 = vtanh.f32 %v2999_v46 }
0x1011   : > { %v4064_v9 = vpop.eup %4063 }
0x1012   : > { %v4066_v18 = vpop.eup %4065  ;;  %v3004_v34 = vadd.f32 1.0, %v4064_v9 }
0x1013   : > { %v4068_v14 = vpop.eup %4067  ;;  %v3005_v19 = vadd.f32 1.0, %v4066_v18 }
0x1014   : > { %v4070_v28 = vpop.eup %4069  ;;  %v3006_v39 = vadd.f32 1.0, %v4068_v14  ;;  %v3008_v35 = vmul.f32 %v3004_v34, %v2976_v24 }
0x1015   : > { %v3007_v47 = vadd.f32 1.0, %v4070_v28  ;;  %v3009_v49 = vmul.f32 %v3005_v19, %v2977_v41 }
0x1016   : > { %v3010_v5 = vmul.f32 %v3006_v39, %v2978_v38 }
0x1017   : > { %v3011_v50 = vmul.f32 %v3007_v47, %v2979_v45 }
0x1018   : > { %v3012_v22 = vpack.c.bf16 %v3010_v5, %v3008_v35 }
0x1019   : > { %v3013_v36 = vpack.c.bf16 %v3011_v50, %v3009_v49 }
0x101b   : > { %3179 = vmatprep.mubr.bf16.mxu0 %v3013_v36 }
0x101c   : > { %3180 = vmatmul.mubr.bf16.vlgmr.msra.gmra.mrb[60].mxu0 %v3012_v22 }
0x10ef   : > { %v3554_v51 = vpop.f32.mrb[60].mxu0 }
0x10f0   : > { %v3555_v33 = vpop.f32.mrb[61].mxu0 }
0x10f1   : > { %v3556_v56 = vadd.f32 %v3555_v33, %v3554_v51  ;;  %v3557_v57 = vpop.f32.mrb[62].mxu0 }
0x10f2   : > { %v3558_v25 = vpop.f32.mrb[63].mxu0 }
0x10f3   : > { %v3182_v20 = vadd.f32 %v3556_v56, %v3417_v54  ;;  %v3559_v37 = vadd.f32 %v3558_v25, %v3557_v57 }
0x10f5   : > { %v3188_v48 = vadd.f32 %v3182_v20, %v5001_v60  ;;  %v3185_v59 = vadd.f32 %v3559_v37, %v3417_v54 }
0x10f7   : > { %3190 = vst [vmem:[%s449_s15] sm:$0xff] %v3188_v48  ;;  %v3189_v61 = vadd.f32 %v3185_v59, %v5003_v42 }
0x10f9   : > { %3191 = vst [vmem:[%s449_s15 + $0x8] sm:$0xff] %v3189_v61 }
0x10fa PF: > { %s24_s13 = sadd.s32 1, %s4261_s13  }
0x10fb   : > { %p21_p10 = scmp.ge.s32.totalorder %s24_s13, 4  }
0x10fd   :  { %23 = sbr.rel (!%p21_p10) target bundleno = 4 (0x4), region = 115 }
0x1104   :  { %3214 = vsyncpa [#allocation4], 1 }
0x1105   :  { %3216 = vsyncpa [#allocation4 + $0x1], 1 }
0x1106   :  { %3217 = vsyncpa [#allocation6], 1 }
0x1107   :  { %3218 = vsyncpa [#allocation9], 1 }
0x1108   :  { %3219 = vsyncpa [#allocation12], 1 }

</bundles_post_ra>
